<compile_context>
chip_gen: v7x
topology: tpu7x:2x2x1
jax: 0.10.0
libtpu: 0.0.40
codegen_flags: <defaults>
</compile_context>

<pallas_src>
import math
from functools import partial

import jax
import jax.numpy as jnp
from jax import lax
from jax.experimental import pallas as pl
from jax.experimental.pallas import tpu as pltpu


def _layer_norm(x, gamma, beta, eps=1e-12):
    # matches the reference LayerNorm: mean / biased-var over last dim, eps=1e-12
    mean = jnp.mean(x, axis=-1, keepdims=True)
    c = x - mean
    var = jnp.mean(c * c, axis=-1, keepdims=True)
    return gamma * (c * lax.rsqrt(var + eps)) + beta


_PARAM_ORDER = ["wq", "bq", "wk", "bk", "wv", "bv", "wo", "bo",
                "g1", "be1", "w1", "b1", "w2", "b2", "g2", "be2"]
# matmul operands go to the MXU in bf16; biases / LayerNorm params stay f32
_BF16_PARAMS = {"wq", "wk", "wv", "wo", "w1", "w2"}


def encoder_stack_kernel(n_head,
                         x_ref, bias_ref,
                         wq_ref, bq_ref, wk_ref, bk_ref, wv_ref, bv_ref,
                         wo_ref, bo_ref, g1_ref, be1_ref,
                         w1_ref, b1_ref, w2_ref, b2_ref, g2_ref, be2_ref,
                         out_ref):
    l = pl.program_id(1)

    # Layer 0 seeds the resident output block with the embedded input; later
    # layers read the previous layer's activations straight out of out_ref,
    # which stays resident in VMEM across the inner ("arbitrary") layer axis.
    @pl.when(l == 0)
    def _():
        out_ref[...] = x_ref[...]

    x = out_ref[...]                                  # (bb, S, D) f32
    bb, S, D = x.shape
    dh = D // n_head
    scale = 1.0 / math.sqrt(dh)

    x2 = x.reshape(bb * S, D)
    xb = x2.astype(jnp.bfloat16)

    # ---- fused QKV projections over all (batch, seq) rows -----------------
    q = jnp.dot(xb, wq_ref[0], preferred_element_type=jnp.float32) + bq_ref[0]
    k = jnp.dot(xb, wk_ref[0], preferred_element_type=jnp.float32) + bk_ref[0]
    v = jnp.dot(xb, wv_ref[0], preferred_element_type=jnp.float32) + bv_ref[0]

    q3 = q.reshape(bb, S, D)
    k3 = k.reshape(bb, S, D)
    v3 = v.reshape(bb, S, D)

    # additive key-padding bias, broadcast once (hoisted out of the head loop)
    bias = jnp.broadcast_to(bias_ref[...], (bb, S, S))

    wo = wo_ref[0]                                    # (D, D) bf16
    attn = jnp.zeros((bb * S, D), jnp.float32)

    # TODO(synk): replace the static head loop with a single
    # 'bqhd,bkhd->bhqk' einsum once multi-batch-dim dot_general lowering is
    # guaranteed on the target Mosaic version; the 3-D batched form below is
    # the documented-safe pattern.
    for h in range(n_head):                           # static unroll, n_head small
        sl = slice(h * dh, (h + 1) * dh)
        qh = q3[:, :, sl].astype(jnp.bfloat16)        # (bb, S, dh)
        kh = k3[:, :, sl].astype(jnp.bfloat16)
        vh = v3[:, :, sl].astype(jnp.bfloat16)

        s = jnp.einsum("bqd,bkd->bqk", qh, kh,
                       preferred_element_type=jnp.float32) * scale + bias
        s = s - jnp.max(s, axis=-1, keepdims=True)
        p = jnp.exp(s)
        p = p * pl.reciprocal(jnp.sum(p, axis=-1, keepdims=True), approx=True)
        ctx = jnp.einsum("bqk,bkd->bqd", p.astype(jnp.bfloat16), vh,
                         preferred_element_type=jnp.float32)       # (bb, S, dh)

        # fold concat(heads) @ Wo into per-head accumulation:
        #   concat_h(ctx_h) @ Wo == sum_h  ctx_h @ Wo[h*dh:(h+1)*dh, :]
        attn = attn + jnp.dot(ctx.reshape(bb * S, dh).astype(jnp.bfloat16),
                              wo[sl, :], preferred_element_type=jnp.float32)
    attn = attn + bo_ref[0]

    # ---- add & norm 1 ------------------------------------------------------
    x1 = _layer_norm(x2 + attn, g1_ref[0], be1_ref[0])

    # ---- position-wise FFN --------------------------------------------------
    h1 = jnp.dot(x1.astype(jnp.bfloat16), w1_ref[0],
                 preferred_element_type=jnp.float32) + b1_ref[0]
    h1 = jnp.maximum(h1, 0.0)
    ff = jnp.dot(h1.astype(jnp.bfloat16), w2_ref[0],
                 preferred_element_type=jnp.float32) + b2_ref[0]

    # ---- add & norm 2 ------------------------------------------------------
    y = _layer_norm(x1 + ff, g2_ref[0], be2_ref[0])
    out_ref[...] = y.reshape(bb, S, D)


def encoder_stack(x, mask_bias, stacked, n_head, *, b_blk=None,
                  vmem_limit_bytes=32 * 1024 * 1024):
    """Run all encoder layers in one pallas_call.

    x:         (B, S, D) f32 embedded input
    mask_bias: (B, 1, S) f32 additive bias (0 = keep, -10000 = masked key)
    stacked:   dict of per-layer params stacked along a leading layer axis
    """
    B, S, D = x.shape
    L = stacked["wq"].shape[0]
    if b_blk is None:
        b_blk = B          # toy sizes: fold the whole batch into one block
    grid = (pl.cdiv(B, b_blk), L)

    def batch_spec(shape):
        return pl.BlockSpec((b_blk,) + tuple(shape[1:]),
                            lambda b, l, _n=len(shape): (b,) + (0,) * (_n - 1))

    def layer_spec(shape):
        return pl.BlockSpec((1,) + tuple(shape[1:]),
                            lambda b, l, _n=len(shape): (l,) + (0,) * (_n - 1))

    weight_args = [stacked[k] for k in _PARAM_ORDER]
    in_specs = [batch_spec(x.shape), batch_spec(mask_bias.shape)]
    in_specs += [layer_spec(w.shape) for w in weight_args]

    return pl.pallas_call(
        partial(encoder_stack_kernel, n_head),
        out_shape=jax.ShapeDtypeStruct((B, S, D), jnp.float32),
        grid=grid,
        in_specs=in_specs,
        out_specs=pl.BlockSpec((b_blk, S, D), lambda b, l: (b, 0, 0)),
        compiler_params=pltpu.CompilerParams(
            dimension_semantics=("parallel", "arbitrary"),
            vmem_limit_bytes=vmem_limit_bytes),
    )(x, mask_bias, *weight_args)


def sinusoidal_pe(max_len, d_model):
    pos = jnp.arange(max_len, dtype=jnp.float32)[:, None]
    i2 = jnp.arange(0, d_model, 2, dtype=jnp.float32)[None, :]
    angle = pos / jnp.power(10000.0, i2 / d_model)
    pe = jnp.zeros((max_len, d_model), dtype=jnp.float32)
    pe = pe.at[:, 0::2].set(jnp.sin(angle))
    pe = pe.at[:, 1::2].set(jnp.cos(angle))
    return pe


def encoder_forward(tokens, mask, emb_table, pe, stacked_params, n_head):
    """mask: (B, 1, S) with 1.0 = keep key position, 0.0 = padded key."""
    B, S = tokens.shape
    # TransformerEmbedding: token embedding + positional encoding (dropout = id).
    # The gather stays in plain JAX (no clean rectangular-tile equivalent).
    x = emb_table[tokens] + pe[:S][None, :, :]
    # additive attention bias == masked_fill(mask == 0, -10000) for a 0/1 mask
    mask_bias = (mask.astype(jnp.float32) - 1.0) * 10000.0           # (B, 1, S)
    return encoder_stack(x, mask_bias, stacked_params, n_head)


if __name__ == "__main__":
    # small, lane-dense shapes consistent with the module's forward
    vocab_size, d_model, max_len = 50, 128, 16
    n_head, n_layers, hidden = 4, 2, 256
    B, S = 2, 8
    pad_idx = 1

    key = jax.random.PRNGKey(0)
    keys = jax.random.split(key, 2 + n_layers)

    tokens = jax.random.randint(keys[0], (B, S), 0, vocab_size, dtype=jnp.int32)

    emb_table = 0.02 * jax.random.normal(keys[1], (vocab_size, d_model), jnp.float32)
    emb_table = emb_table.at[pad_idx].set(0.0)      # nn.Embedding(padding_idx=1)

    pe = sinusoidal_pe(max_len, d_model)

    def init_layer(k):
        ks = jax.random.split(k, 6)

        def lin(kk, din, dout):
            w = jax.random.normal(kk, (din, dout), jnp.float32) / math.sqrt(din)
            b = jnp.zeros((1, dout), jnp.float32)
            return w, b

        wq, bq = lin(ks[0], d_model, d_model)
        wk, bk = lin(ks[1], d_model, d_model)
        wv, bv = lin(ks[2], d_model, d_model)
        wo, bo = lin(ks[3], d_model, d_model)
        w1, b1 = lin(ks[4], d_model, hidden)
        w2, b2 = lin(ks[5], hidden, d_model)
        return dict(wq=wq, bq=bq, wk=wk, bk=bk, wv=wv, bv=bv, wo=wo, bo=bo,
                    g1=jnp.ones((1, d_model), jnp.float32),
                    be1=jnp.zeros((1, d_model), jnp.float32),
                    w1=w1, b1=b1, w2=w2, b2=b2,
                    g2=jnp.ones((1, d_model), jnp.float32),
                    be2=jnp.zeros((1, d_model), jnp.float32))

    layer_params = [init_layer(keys[2 + i]) for i in range(n_layers)]

    # stack per-layer params along a leading layer axis; MXU weights in bf16
    stacked = {}
    for name in _PARAM_ORDER:
        arr = jnp.stack([p[name] for p in layer_params], axis=0)
        if name in _BF16_PARAMS:
            arr = arr.astype(jnp.bfloat16)
        stacked[name] = arr

    # src mask: keep positions whose KEY token is not padding -> (B, 1, S)
    keep = (tokens != pad_idx).astype(jnp.float32)
    mask = keep[:, None, :]

    out = encoder_forward(tokens, mask, emb_table, pe, stacked, n_head)
    out = jax.block_until_ready(out)
    assert out.shape == (B, S, d_model) and out.dtype == jnp.float32
    print("KERNEL_OK")
</pallas_src>

<mosaic_0001>
module attributes {stable_mosaic.version = 11 : i64} {
  func.func @encoder_stack_kernel(%arg0: i32, %arg1: i32, %arg2: memref<2x8x128xf32, #tpu.memory_space<vmem>>, %arg3: memref<2x1x8xf32, #tpu.memory_space<vmem>>, %arg4: memref<1x128x128xbf16, #tpu.memory_space<vmem>>, %arg5: memref<1x1x128xf32, #tpu.memory_space<vmem>>, %arg6: memref<1x128x128xbf16, #tpu.memory_space<vmem>>, %arg7: memref<1x1x128xf32, #tpu.memory_space<vmem>>, %arg8: memref<1x128x128xbf16, #tpu.memory_space<vmem>>, %arg9: memref<1x1x128xf32, #tpu.memory_space<vmem>>, %arg10: memref<1x128x128xbf16, #tpu.memory_space<vmem>>, %arg11: memref<1x1x128xf32, #tpu.memory_space<vmem>>, %arg12: memref<1x1x128xf32, #tpu.memory_space<vmem>>, %arg13: memref<1x1x128xf32, #tpu.memory_space<vmem>>, %arg14: memref<1x128x256xbf16, #tpu.memory_space<vmem>>, %arg15: memref<1x1x256xf32, #tpu.memory_space<vmem>>, %arg16: memref<1x256x128xbf16, #tpu.memory_space<vmem>>, %arg17: memref<1x1x128xf32, #tpu.memory_space<vmem>>, %arg18: memref<1x1x128xf32, #tpu.memory_space<vmem>>, %arg19: memref<1x1x128xf32, #tpu.memory_space<vmem>>, %arg20: memref<2x8x128xf32, #tpu.memory_space<vmem>>) attributes {dimension_semantics = [#tpu.dimension_semantics<parallel>, #tpu.dimension_semantics<arbitrary>], iteration_bounds = array<i64: 1, 2>, scalar_prefetch = 0 : i64, scratch_operands = 0 : i64, tpu.core_type = #tpu.core_type<tc>, window_params = [{transform_indices = @transform_0, window_bounds = array<i64: 2, 8, 128>}, {transform_indices = @transform_1, window_bounds = array<i64: 2, 1, 8>}, {transform_indices = @transform_2, window_bounds = array<i64: 1, 128, 128>}, {transform_indices = @transform_3, window_bounds = array<i64: 1, 1, 128>}, {transform_indices = @transform_4, window_bounds = array<i64: 1, 128, 128>}, {transform_indices = @transform_5, window_bounds = array<i64: 1, 1, 128>}, {transform_indices = @transform_6, window_bounds = array<i64: 1, 128, 128>}, {transform_indices = @transform_7, window_bounds = array<i64: 1, 1, 128>}, {transform_indices = @transform_8, window_bounds = array<i64: 1, 128, 128>}, {transform_indices = @transform_9, window_bounds = array<i64: 1, 1, 128>}, {transform_indices = @transform_10, window_bounds = array<i64: 1, 1, 128>}, {transform_indices = @transform_11, window_bounds = array<i64: 1, 1, 128>}, {transform_indices = @transform_12, window_bounds = array<i64: 1, 128, 256>}, {transform_indices = @transform_13, window_bounds = array<i64: 1, 1, 256>}, {transform_indices = @transform_14, window_bounds = array<i64: 1, 256, 128>}, {transform_indices = @transform_15, window_bounds = array<i64: 1, 1, 128>}, {transform_indices = @transform_16, window_bounds = array<i64: 1, 1, 128>}, {transform_indices = @transform_17, window_bounds = array<i64: 1, 1, 128>}, {transform_indices = @transform_18, window_bounds = array<i64: 2, 8, 128>}]} {
    %c0_i32 = arith.constant 0 : i32
    %0 = arith.cmpi eq, %arg1, %c0_i32 : i32
    %1 = arith.extui %0 : i1 to i32
    %c0_i32_0 = arith.constant 0 : i32
    %2 = arith.cmpi ne, %1, %c0_i32_0 : i32
    scf.if %2 {
      %c0_97 = arith.constant 0 : index
      %c0_98 = arith.constant 0 : index
      %c0_99 = arith.constant 0 : index
      %218 = vector.load %arg2[%c0_97, %c0_98, %c0_99] : memref<2x8x128xf32, #tpu.memory_space<vmem>>, vector<2x8x128xf32>
      %c0_100 = arith.constant 0 : index
      %c0_101 = arith.constant 0 : index
      %c0_102 = arith.constant 0 : index
      %219 = vector.load %arg20[%c0_100, %c0_101, %c0_102] : memref<2x8x128xf32, #tpu.memory_space<vmem>>, vector<2x8x128xf32>
      tpu.vector_store %arg20[%c0_100, %c0_101, %c0_102], %218 {strides = array<i32>} : memref<2x8x128xf32, #tpu.memory_space<vmem>>, vector<2x8x128xf32>,
    } else {
    }
    %c0 = arith.constant 0 : index
    %c0_1 = arith.constant 0 : index
    %c0_2 = arith.constant 0 : index
    %3 = vector.load %arg20[%c0, %c0_1, %c0_2] : memref<2x8x128xf32, #tpu.memory_space<vmem>>, vector<2x8x128xf32>
    %4 = vector.shape_cast %3 : vector<2x8x128xf32> to vector<16x128xf32>
    %5 = arith.truncf %4 : vector<16x128xf32> to vector<16x128xbf16>
    %c0_3 = arith.constant 0 : index
    %c0_4 = arith.constant 0 : index
    %c0_5 = arith.constant 0 : index
    %6 = vector.load %arg4[%c0_3, %c0_4, %c0_5] : memref<1x128x128xbf16, #tpu.memory_space<vmem>>, vector<1x128x128xbf16>
    %7 = vector.shape_cast %6 : vector<1x128x128xbf16> to vector<128x128xbf16>
    %cst = arith.constant dense<0.000000e+00> : vector<16x128xf32>
    %8 = tpu.matmul %5, %7, %cst {dimension_numbers = #tpu.dot_dimension_numbers<[1], [0], [0], [1], [0, 0, 1, 1], [], []>} : vector<16x128xbf16>, vector<128x128xbf16>, vector<16x128xf32> -> vector<16x128xf32>
    %c0_6 = arith.constant 0 : index
    %c0_7 = arith.constant 0 : index
    %c0_8 = arith.constant 0 : index
    %9 = vector.load %arg5[%c0_6, %c0_7, %c0_8] : memref<1x1x128xf32, #tpu.memory_space<vmem>>, vector<1x1x128xf32>
    %10 = vector.shape_cast %9 : vector<1x1x128xf32> to vector<1x128xf32>
    %11 = vector.broadcast %10 : vector<1x128xf32> to vector<16x128xf32>
    %12 = arith.addf %8, %11 : vector<16x128xf32>
    %c0_9 = arith.constant 0 : index
    %c0_10 = arith.constant 0 : index
    %c0_11 = arith.constant 0 : index
    %13 = vector.load %arg6[%c0_9, %c0_10, %c0_11] : memref<1x128x128xbf16, #tpu.memory_space<vmem>>, vector<1x128x128xbf16>
    %14 = vector.shape_cast %13 : vector<1x128x128xbf16> to vector<128x128xbf16>
    %cst_12 = arith.constant dense<0.000000e+00> : vector<16x128xf32>
    %15 = tpu.matmul %5, %14, %cst_12 {dimension_numbers = #tpu.dot_dimension_numbers<[1], [0], [0], [1], [0, 0, 1, 1], [], []>} : vector<16x128xbf16>, vector<128x128xbf16>, vector<16x128xf32> -> vector<16x128xf32>
    %c0_13 = arith.constant 0 : index
    %c0_14 = arith.constant 0 : index
    %c0_15 = arith.constant 0 : index
    %16 = vector.load %arg7[%c0_13, %c0_14, %c0_15] : memref<1x1x128xf32, #tpu.memory_space<vmem>>, vector<1x1x128xf32>
    %17 = vector.shape_cast %16 : vector<1x1x128xf32> to vector<1x128xf32>
    %18 = vector.broadcast %17 : vector<1x128xf32> to vector<16x128xf32>
    %19 = arith.addf %15, %18 : vector<16x128xf32>
    %c0_16 = arith.constant 0 : index
    %c0_17 = arith.constant 0 : index
    %c0_18 = arith.constant 0 : index
    %20 = vector.load %arg8[%c0_16, %c0_17, %c0_18] : memref<1x128x128xbf16, #tpu.memory_space<vmem>>, vector<1x128x128xbf16>
    %21 = vector.shape_cast %20 : vector<1x128x128xbf16> to vector<128x128xbf16>
    %cst_19 = arith.constant dense<0.000000e+00> : vector<16x128xf32>
    %22 = tpu.matmul %5, %21, %cst_19 {dimension_numbers = #tpu.dot_dimension_numbers<[1], [0], [0], [1], [0, 0, 1, 1], [], []>} : vector<16x128xbf16>, vector<128x128xbf16>, vector<16x128xf32> -> vector<16x128xf32>
    %c0_20 = arith.constant 0 : index
    %c0_21 = arith.constant 0 : index
    %c0_22 = arith.constant 0 : index
    %23 = vector.load %arg9[%c0_20, %c0_21, %c0_22] : memref<1x1x128xf32, #tpu.memory_space<vmem>>, vector<1x1x128xf32>
    %24 = vector.shape_cast %23 : vector<1x1x128xf32> to vector<1x128xf32>
    %25 = vector.broadcast %24 : vector<1x128xf32> to vector<16x128xf32>
    %26 = arith.addf %22, %25 : vector<16x128xf32>
    %27 = vector.shape_cast %12 : vector<16x128xf32> to vector<2x8x128xf32>
    %28 = vector.shape_cast %19 : vector<16x128xf32> to vector<2x8x128xf32>
    %29 = vector.shape_cast %26 : vector<16x128xf32> to vector<2x8x128xf32>
    %c0_23 = arith.constant 0 : index
    %c0_24 = arith.constant 0 : index
    %c0_25 = arith.constant 0 : index
    %30 = vector.load %arg3[%c0_23, %c0_24, %c0_25] : memref<2x1x8xf32, #tpu.memory_space<vmem>>, vector<2x1x8xf32>
    %31 = vector.shape_cast %30 : vector<2x1x8xf32> to vector<2x1x8xf32>
    %32 = vector.broadcast %31 : vector<2x1x8xf32> to vector<2x8x8xf32>
    %c0_26 = arith.constant 0 : index
    %c0_27 = arith.constant 0 : index
    %c0_28 = arith.constant 0 : index
    %33 = vector.load %arg10[%c0_26, %c0_27, %c0_28] : memref<1x128x128xbf16, #tpu.memory_space<vmem>>, vector<1x128x128xbf16>
    %34 = vector.shape_cast %33 : vector<1x128x128xbf16> to vector<128x128xbf16>
    %cst_29 = arith.constant 0.000000e+00 : f32
    %35 = vector.broadcast %cst_29 : f32 to vector<16x128xf32>
    %36 = vector.extract_strided_slice %27 {offsets = [0, 0, 0], sizes = [2, 8, 32], strides = [1, 1, 1]} : vector<2x8x128xf32> to vector<2x8x32xf32>
    %37 = arith.truncf %36 : vector<2x8x32xf32> to vector<2x8x32xbf16>
    %38 = vector.extract_strided_slice %28 {offsets = [0, 0, 0], sizes = [2, 8, 32], strides = [1, 1, 1]} : vector<2x8x128xf32> to vector<2x8x32xf32>
    %39 = arith.truncf %38 : vector<2x8x32xf32> to vector<2x8x32xbf16>
    %40 = vector.extract_strided_slice %29 {offsets = [0, 0, 0], sizes = [2, 8, 32], strides = [1, 1, 1]} : vector<2x8x128xf32> to vector<2x8x32xf32>
    %41 = arith.truncf %40 : vector<2x8x32xf32> to vector<2x8x32xbf16>
    "tpu.trace_start"() <{level = 10 : i32, message = "bqd,bkd->bqk"}> : () -> ()
    %cst_30 = arith.constant dense<0.000000e+00> : vector<2x8x8xf32>
    %42 = tpu.matmul %37, %39, %cst_30 {dimension_numbers = #tpu.dot_dimension_numbers<[2], [2], [1], [1], [0, 0, 0, 1, 1, 1], [0], [0]>} : vector<2x8x32xbf16>, vector<2x8x32xbf16>, vector<2x8x8xf32> -> vector<2x8x8xf32>
    "tpu.trace_stop"() : () -> ()
    %cst_31 = arith.constant 0.176776692 : f32
    %43 = vector.broadcast %cst_31 : f32 to vector<2x8x8xf32>
    %44 = arith.mulf %42, %43 : vector<2x8x8xf32>
    %45 = arith.addf %44, %32 : vector<2x8x8xf32>
    %cst_32 = arith.constant dense<0xFF800000> : vector<2x8xf32>
    %46 = vector.multi_reduction <maximumf>, %45, %cst_32 [2] : vector<2x8x8xf32> to vector<2x8xf32>
    %47 = vector.shape_cast %46 : vector<2x8xf32> to vector<2x8x1xf32>
    %48 = vector.broadcast %47 : vector<2x8x1xf32> to vector<2x8x8xf32>
    %49 = arith.subf %45, %48 : vector<2x8x8xf32>
    %50 = math.exp %49 : vector<2x8x8xf32>
    %cst_33 = arith.constant dense<0.000000e+00> : vector<2x8xf32>
    %51 = vector.multi_reduction <add>, %50, %cst_33 [2] : vector<2x8x8xf32> to vector<2x8xf32>
    %52 = vector.shape_cast %51 : vector<2x8xf32> to vector<2x8x1xf32>
    %53 = tpu.reciprocal %52 {approx = true} : vector<2x8x1xf32> -> vector<2x8x1xf32>
    %54 = vector.broadcast %53 : vector<2x8x1xf32> to vector<2x8x8xf32>
    %55 = arith.mulf %50, %54 : vector<2x8x8xf32>
    %56 = arith.truncf %55 : vector<2x8x8xf32> to vector<2x8x8xbf16>
    "tpu.trace_start"() <{level = 10 : i32, message = "bqk,bkd->bqd"}> : () -> ()
    %cst_34 = arith.constant dense<0.000000e+00> : vector<2x8x32xf32>
    %57 = tpu.matmul %56, %41, %cst_34 {dimension_numbers = #tpu.dot_dimension_numbers<[2], [1], [1], [2], [0, 0, 0, 1, 1, 2], [0], [0]>} : vector<2x8x8xbf16>, vector<2x8x32xbf16>, vector<2x8x32xf32> -> vector<2x8x32xf32>
    "tpu.trace_stop"() : () -> ()
    %58 = vector.shape_cast %57 : vector<2x8x32xf32> to vector<16x32xf32>
    %59 = arith.truncf %58 : vector<16x32xf32> to vector<16x32xbf16>
    %60 = vector.extract_strided_slice %34 {offsets = [0, 0], sizes = [32, 128], strides = [1, 1]} : vector<128x128xbf16> to vector<32x128xbf16>
    %cst_35 = arith.constant dense<0.000000e+00> : vector<16x128xf32>
    %61 = tpu.matmul %59, %60, %cst_35 {dimension_numbers = #tpu.dot_dimension_numbers<[1], [0], [0], [1], [0, 0, 1, 1], [], []>} : vector<16x32xbf16>, vector<32x128xbf16>, vector<16x128xf32> -> vector<16x128xf32>
    %62 = arith.addf %35, %61 : vector<16x128xf32>
    %63 = vector.extract_strided_slice %27 {offsets = [0, 0, 32], sizes = [2, 8, 32], strides = [1, 1, 1]} : vector<2x8x128xf32> to vector<2x8x32xf32>
    %64 = arith.truncf %63 : vector<2x8x32xf32> to vector<2x8x32xbf16>
    %65 = vector.extract_strided_slice %28 {offsets = [0, 0, 32], sizes = [2, 8, 32], strides = [1, 1, 1]} : vector<2x8x128xf32> to vector<2x8x32xf32>
    %66 = arith.truncf %65 : vector<2x8x32xf32> to vector<2x8x32xbf16>
    %67 = vector.extract_strided_slice %29 {offsets = [0, 0, 32], sizes = [2, 8, 32], strides = [1, 1, 1]} : vector<2x8x128xf32> to vector<2x8x32xf32>
    %68 = arith.truncf %67 : vector<2x8x32xf32> to vector<2x8x32xbf16>
    "tpu.trace_start"() <{level = 10 : i32, message = "bqd,bkd->bqk"}> : () -> ()
    %cst_36 = arith.constant dense<0.000000e+00> : vector<2x8x8xf32>
    %69 = tpu.matmul %64, %66, %cst_36 {dimension_numbers = #tpu.dot_dimension_numbers<[2], [2], [1], [1], [0, 0, 0, 1, 1, 1], [0], [0]>} : vector<2x8x32xbf16>, vector<2x8x32xbf16>, vector<2x8x8xf32> -> vector<2x8x8xf32>
    "tpu.trace_stop"() : () -> ()
    %cst_37 = arith.constant 0.176776692 : f32
    %70 = vector.broadcast %cst_37 : f32 to vector<2x8x8xf32>
    %71 = arith.mulf %69, %70 : vector<2x8x8xf32>
    %72 = arith.addf %71, %32 : vector<2x8x8xf32>
    %cst_38 = arith.constant dense<0xFF800000> : vector<2x8xf32>
    %73 = vector.multi_reduction <maximumf>, %72, %cst_38 [2] : vector<2x8x8xf32> to vector<2x8xf32>
    %74 = vector.shape_cast %73 : vector<2x8xf32> to vector<2x8x1xf32>
    %75 = vector.broadcast %74 : vector<2x8x1xf32> to vector<2x8x8xf32>
    %76 = arith.subf %72, %75 : vector<2x8x8xf32>
    %77 = math.exp %76 : vector<2x8x8xf32>
    %cst_39 = arith.constant dense<0.000000e+00> : vector<2x8xf32>
    %78 = vector.multi_reduction <add>, %77, %cst_39 [2] : vector<2x8x8xf32> to vector<2x8xf32>
    %79 = vector.shape_cast %78 : vector<2x8xf32> to vector<2x8x1xf32>
    %80 = tpu.reciprocal %79 {approx = true} : vector<2x8x1xf32> -> vector<2x8x1xf32>
    %81 = vector.broadcast %80 : vector<2x8x1xf32> to vector<2x8x8xf32>
    %82 = arith.mulf %77, %81 : vector<2x8x8xf32>
    %83 = arith.truncf %82 : vector<2x8x8xf32> to vector<2x8x8xbf16>
    "tpu.trace_start"() <{level = 10 : i32, message = "bqk,bkd->bqd"}> : () -> ()
    %cst_40 = arith.constant dense<0.000000e+00> : vector<2x8x32xf32>
    %84 = tpu.matmul %83, %68, %cst_40 {dimension_numbers = #tpu.dot_dimension_numbers<[2], [1], [1], [2], [0, 0, 0, 1, 1, 2], [0], [0]>} : vector<2x8x8xbf16>, vector<2x8x32xbf16>, vector<2x8x32xf32> -> vector<2x8x32xf32>
    "tpu.trace_stop"() : () -> ()
    %85 = vector.shape_cast %84 : vector<2x8x32xf32> to vector<16x32xf32>
    %86 = arith.truncf %85 : vector<16x32xf32> to vector<16x32xbf16>
    %87 = vector.extract_strided_slice %34 {offsets = [32, 0], sizes = [32, 128], strides = [1, 1]} : vector<128x128xbf16> to vector<32x128xbf16>
    %cst_41 = arith.constant dense<0.000000e+00> : vector<16x128xf32>
    %88 = tpu.matmul %86, %87, %cst_41 {dimension_numbers = #tpu.dot_dimension_numbers<[1], [0], [0], [1], [0, 0, 1, 1], [], []>} : vector<16x32xbf16>, vector<32x128xbf16>, vector<16x128xf32> -> vector<16x128xf32>
    %89 = arith.addf %62, %88 : vector<16x128xf32>
    %90 = vector.extract_strided_slice %27 {offsets = [0, 0, 64], sizes = [2, 8, 32], strides = [1, 1, 1]} : vector<2x8x128xf32> to vector<2x8x32xf32>
    %91 = arith.truncf %90 : vector<2x8x32xf32> to vector<2x8x32xbf16>
    %92 = vector.extract_strided_slice %28 {offsets = [0, 0, 64], sizes = [2, 8, 32], strides = [1, 1, 1]} : vector<2x8x128xf32> to vector<2x8x32xf32>
    %93 = arith.truncf %92 : vector<2x8x32xf32> to vector<2x8x32xbf16>
    %94 = vector.extract_strided_slice %29 {offsets = [0, 0, 64], sizes = [2, 8, 32], strides = [1, 1, 1]} : vector<2x8x128xf32> to vector<2x8x32xf32>
    %95 = arith.truncf %94 : vector<2x8x32xf32> to vector<2x8x32xbf16>
    "tpu.trace_start"() <{level = 10 : i32, message = "bqd,bkd->bqk"}> : () -> ()
    %cst_42 = arith.constant dense<0.000000e+00> : vector<2x8x8xf32>
    %96 = tpu.matmul %91, %93, %cst_42 {dimension_numbers = #tpu.dot_dimension_numbers<[2], [2], [1], [1], [0, 0, 0, 1, 1, 1], [0], [0]>} : vector<2x8x32xbf16>, vector<2x8x32xbf16>, vector<2x8x8xf32> -> vector<2x8x8xf32>
    "tpu.trace_stop"() : () -> ()
    %cst_43 = arith.constant 0.176776692 : f32
    %97 = vector.broadcast %cst_43 : f32 to vector<2x8x8xf32>
    %98 = arith.mulf %96, %97 : vector<2x8x8xf32>
    %99 = arith.addf %98, %32 : vector<2x8x8xf32>
    %cst_44 = arith.constant dense<0xFF800000> : vector<2x8xf32>
    %100 = vector.multi_reduction <maximumf>, %99, %cst_44 [2] : vector<2x8x8xf32> to vector<2x8xf32>
    %101 = vector.shape_cast %100 : vector<2x8xf32> to vector<2x8x1xf32>
    %102 = vector.broadcast %101 : vector<2x8x1xf32> to vector<2x8x8xf32>
    %103 = arith.subf %99, %102 : vector<2x8x8xf32>
    %104 = math.exp %103 : vector<2x8x8xf32>
    %cst_45 = arith.constant dense<0.000000e+00> : vector<2x8xf32>
    %105 = vector.multi_reduction <add>, %104, %cst_45 [2] : vector<2x8x8xf32> to vector<2x8xf32>
    %106 = vector.shape_cast %105 : vector<2x8xf32> to vector<2x8x1xf32>
    %107 = tpu.reciprocal %106 {approx = true} : vector<2x8x1xf32> -> vector<2x8x1xf32>
    %108 = vector.broadcast %107 : vector<2x8x1xf32> to vector<2x8x8xf32>
    %109 = arith.mulf %104, %108 : vector<2x8x8xf32>
    %110 = arith.truncf %109 : vector<2x8x8xf32> to vector<2x8x8xbf16>
    "tpu.trace_start"() <{level = 10 : i32, message = "bqk,bkd->bqd"}> : () -> ()
    %cst_46 = arith.constant dense<0.000000e+00> : vector<2x8x32xf32>
    %111 = tpu.matmul %110, %95, %cst_46 {dimension_numbers = #tpu.dot_dimension_numbers<[2], [1], [1], [2], [0, 0, 0, 1, 1, 2], [0], [0]>} : vector<2x8x8xbf16>, vector<2x8x32xbf16>, vector<2x8x32xf32> -> vector<2x8x32xf32>
    "tpu.trace_stop"() : () -> ()
    %112 = vector.shape_cast %111 : vector<2x8x32xf32> to vector<16x32xf32>
    %113 = arith.truncf %112 : vector<16x32xf32> to vector<16x32xbf16>
    %114 = vector.extract_strided_slice %34 {offsets = [64, 0], sizes = [32, 128], strides = [1, 1]} : vector<128x128xbf16> to vector<32x128xbf16>
    %cst_47 = arith.constant dense<0.000000e+00> : vector<16x128xf32>
    %115 = tpu.matmul %113, %114, %cst_47 {dimension_numbers = #tpu.dot_dimension_numbers<[1], [0], [0], [1], [0, 0, 1, 1], [], []>} : vector<16x32xbf16>, vector<32x128xbf16>, vector<16x128xf32> -> vector<16x128xf32>
    %116 = arith.addf %89, %115 : vector<16x128xf32>
    %117 = vector.extract_strided_slice %27 {offsets = [0, 0, 96], sizes = [2, 8, 32], strides = [1, 1, 1]} : vector<2x8x128xf32> to vector<2x8x32xf32>
    %118 = arith.truncf %117 : vector<2x8x32xf32> to vector<2x8x32xbf16>
    %119 = vector.extract_strided_slice %28 {offsets = [0, 0, 96], sizes = [2, 8, 32], strides = [1, 1, 1]} : vector<2x8x128xf32> to vector<2x8x32xf32>
    %120 = arith.truncf %119 : vector<2x8x32xf32> to vector<2x8x32xbf16>
    %121 = vector.extract_strided_slice %29 {offsets = [0, 0, 96], sizes = [2, 8, 32], strides = [1, 1, 1]} : vector<2x8x128xf32> to vector<2x8x32xf32>
    %122 = arith.truncf %121 : vector<2x8x32xf32> to vector<2x8x32xbf16>
    "tpu.trace_start"() <{level = 10 : i32, message = "bqd,bkd->bqk"}> : () -> ()
    %cst_48 = arith.constant dense<0.000000e+00> : vector<2x8x8xf32>
    %123 = tpu.matmul %118, %120, %cst_48 {dimension_numbers = #tpu.dot_dimension_numbers<[2], [2], [1], [1], [0, 0, 0, 1, 1, 1], [0], [0]>} : vector<2x8x32xbf16>, vector<2x8x32xbf16>, vector<2x8x8xf32> -> vector<2x8x8xf32>
    "tpu.trace_stop"() : () -> ()
    %cst_49 = arith.constant 0.176776692 : f32
    %124 = vector.broadcast %cst_49 : f32 to vector<2x8x8xf32>
    %125 = arith.mulf %123, %124 : vector<2x8x8xf32>
    %126 = arith.addf %125, %32 : vector<2x8x8xf32>
    %cst_50 = arith.constant dense<0xFF800000> : vector<2x8xf32>
    %127 = vector.multi_reduction <maximumf>, %126, %cst_50 [2] : vector<2x8x8xf32> to vector<2x8xf32>
    %128 = vector.shape_cast %127 : vector<2x8xf32> to vector<2x8x1xf32>
    %129 = vector.broadcast %128 : vector<2x8x1xf32> to vector<2x8x8xf32>
    %130 = arith.subf %126, %129 : vector<2x8x8xf32>
    %131 = math.exp %130 : vector<2x8x8xf32>
    %cst_51 = arith.constant dense<0.000000e+00> : vector<2x8xf32>
    %132 = vector.multi_reduction <add>, %131, %cst_51 [2] : vector<2x8x8xf32> to vector<2x8xf32>
    %133 = vector.shape_cast %132 : vector<2x8xf32> to vector<2x8x1xf32>
    %134 = tpu.reciprocal %133 {approx = true} : vector<2x8x1xf32> -> vector<2x8x1xf32>
    %135 = vector.broadcast %134 : vector<2x8x1xf32> to vector<2x8x8xf32>
    %136 = arith.mulf %131, %135 : vector<2x8x8xf32>
    %137 = arith.truncf %136 : vector<2x8x8xf32> to vector<2x8x8xbf16>
    "tpu.trace_start"() <{level = 10 : i32, message = "bqk,bkd->bqd"}> : () -> ()
    %cst_52 = arith.constant dense<0.000000e+00> : vector<2x8x32xf32>
    %138 = tpu.matmul %137, %122, %cst_52 {dimension_numbers = #tpu.dot_dimension_numbers<[2], [1], [1], [2], [0, 0, 0, 1, 1, 2], [0], [0]>} : vector<2x8x8xbf16>, vector<2x8x32xbf16>, vector<2x8x32xf32> -> vector<2x8x32xf32>
    "tpu.trace_stop"() : () -> ()
    %139 = vector.shape_cast %138 : vector<2x8x32xf32> to vector<16x32xf32>
    %140 = arith.truncf %139 : vector<16x32xf32> to vector<16x32xbf16>
    %141 = vector.extract_strided_slice %34 {offsets = [96, 0], sizes = [32, 128], strides = [1, 1]} : vector<128x128xbf16> to vector<32x128xbf16>
    %cst_53 = arith.constant dense<0.000000e+00> : vector<16x128xf32>
    %142 = tpu.matmul %140, %141, %cst_53 {dimension_numbers = #tpu.dot_dimension_numbers<[1], [0], [0], [1], [0, 0, 1, 1], [], []>} : vector<16x32xbf16>, vector<32x128xbf16>, vector<16x128xf32> -> vector<16x128xf32>
    %143 = arith.addf %116, %142 : vector<16x128xf32>
    %c0_54 = arith.constant 0 : index
    %c0_55 = arith.constant 0 : index
    %c0_56 = arith.constant 0 : index
    %144 = vector.load %arg11[%c0_54, %c0_55, %c0_56] : memref<1x1x128xf32, #tpu.memory_space<vmem>>, vector<1x1x128xf32>
    %145 = vector.shape_cast %144 : vector<1x1x128xf32> to vector<1x128xf32>
    %146 = vector.broadcast %145 : vector<1x128xf32> to vector<16x128xf32>
    %147 = arith.addf %143, %146 : vector<16x128xf32>
    %148 = arith.addf %4, %147 : vector<16x128xf32>
    %c0_57 = arith.constant 0 : index
    %c0_58 = arith.constant 0 : index
    %c0_59 = arith.constant 0 : index
    %149 = vector.load %arg12[%c0_57, %c0_58, %c0_59] : memref<1x1x128xf32, #tpu.memory_space<vmem>>, vector<1x1x128xf32>
    %150 = vector.shape_cast %149 : vector<1x1x128xf32> to vector<1x128xf32>
    %c0_60 = arith.constant 0 : index
    %c0_61 = arith.constant 0 : index
    %c0_62 = arith.constant 0 : index
    %151 = vector.load %arg13[%c0_60, %c0_61, %c0_62] : memref<1x1x128xf32, #tpu.memory_space<vmem>>, vector<1x1x128xf32>
    %152 = vector.shape_cast %151 : vector<1x1x128xf32> to vector<1x128xf32>
    %cst_63 = arith.constant dense<0.000000e+00> : vector<16xf32>
    %153 = vector.multi_reduction <add>, %148, %cst_63 [1] : vector<16x128xf32> to vector<16xf32>
    %154 = vector.shape_cast %153 : vector<16xf32> to vector<16x1xf32>
    %cst_64 = arith.constant 1.280000e+02 : f32
    %155 = vector.broadcast %cst_64 : f32 to vector<16x1xf32>
    %156 = arith.divf %154, %155 : vector<16x1xf32>
    %157 = vector.broadcast %156 : vector<16x1xf32> to vector<16x128xf32>
    %158 = arith.subf %148, %157 : vector<16x128xf32>
    %159 = arith.mulf %158, %158 : vector<16x128xf32>
    %cst_65 = arith.constant dense<0.000000e+00> : vector<16xf32>
    %160 = vector.multi_reduction <add>, %159, %cst_65 [1] : vector<16x128xf32> to vector<16xf32>
    %161 = vector.shape_cast %160 : vector<16xf32> to vector<16x1xf32>
    %cst_66 = arith.constant 1.280000e+02 : f32
    %162 = vector.broadcast %cst_66 : f32 to vector<16x1xf32>
    %163 = arith.divf %161, %162 : vector<16x1xf32>
    %cst_67 = arith.constant 9.99999996E-13 : f32
    %164 = vector.broadcast %cst_67 : f32 to vector<16x1xf32>
    %165 = arith.addf %163, %164 : vector<16x1xf32>
    %166 = math.rsqrt %165 : vector<16x1xf32>
    %167 = vector.broadcast %166 : vector<16x1xf32> to vector<16x128xf32>
    %168 = arith.mulf %158, %167 : vector<16x128xf32>
    %169 = vector.broadcast %150 : vector<1x128xf32> to vector<16x128xf32>
    %170 = arith.mulf %169, %168 : vector<16x128xf32>
    %171 = vector.broadcast %152 : vector<1x128xf32> to vector<16x128xf32>
    %172 = arith.addf %170, %171 : vector<16x128xf32>
    %173 = arith.truncf %172 : vector<16x128xf32> to vector<16x128xbf16>
    %c0_68 = arith.constant 0 : index
    %c0_69 = arith.constant 0 : index
    %c0_70 = arith.constant 0 : index
    %174 = vector.load %arg14[%c0_68, %c0_69, %c0_70] : memref<1x128x256xbf16, #tpu.memory_space<vmem>>, vector<1x128x256xbf16>
    %175 = vector.shape_cast %174 : vector<1x128x256xbf16> to vector<128x256xbf16>
    %cst_71 = arith.constant dense<0.000000e+00> : vector<16x256xf32>
    %176 = tpu.matmul %173, %175, %cst_71 {dimension_numbers = #tpu.dot_dimension_numbers<[1], [0], [0], [1], [0, 0, 1, 1], [], []>} : vector<16x128xbf16>, vector<128x256xbf16>, vector<16x256xf32> -> vector<16x256xf32>
    %c0_72 = arith.constant 0 : index
    %c0_73 = arith.constant 0 : index
    %c0_74 = arith.constant 0 : index
    %177 = vector.load %arg15[%c0_72, %c0_73, %c0_74] : memref<1x1x256xf32, #tpu.memory_space<vmem>>, vector<1x1x256xf32>
    %178 = vector.shape_cast %177 : vector<1x1x256xf32> to vector<1x256xf32>
    %179 = vector.broadcast %178 : vector<1x256xf32> to vector<16x256xf32>
    %180 = arith.addf %176, %179 : vector<16x256xf32>
    %cst_75 = arith.constant 0.000000e+00 : f32
    %181 = vector.broadcast %cst_75 : f32 to vector<16x256xf32>
    %182 = arith.maximumf %180, %181 : vector<16x256xf32>
    %183 = arith.truncf %182 : vector<16x256xf32> to vector<16x256xbf16>
    %c0_76 = arith.constant 0 : index
    %c0_77 = arith.constant 0 : index
    %c0_78 = arith.constant 0 : index
    %184 = vector.load %arg16[%c0_76, %c0_77, %c0_78] : memref<1x256x128xbf16, #tpu.memory_space<vmem>>, vector<1x256x128xbf16>
    %185 = vector.shape_cast %184 : vector<1x256x128xbf16> to vector<256x128xbf16>
    %cst_79 = arith.constant dense<0.000000e+00> : vector<16x128xf32>
    %186 = tpu.matmul %183, %185, %cst_79 {dimension_numbers = #tpu.dot_dimension_numbers<[1], [0], [0], [1], [0, 0, 1, 1], [], []>} : vector<16x256xbf16>, vector<256x128xbf16>, vector<16x128xf32> -> vector<16x128xf32>
    %c0_80 = arith.constant 0 : index
    %c0_81 = arith.constant 0 : index
    %c0_82 = arith.constant 0 : index
    %187 = vector.load %arg17[%c0_80, %c0_81, %c0_82] : memref<1x1x128xf32, #tpu.memory_space<vmem>>, vector<1x1x128xf32>
    %188 = vector.shape_cast %187 : vector<1x1x128xf32> to vector<1x128xf32>
    %189 = vector.broadcast %188 : vector<1x128xf32> to vector<16x128xf32>
    %190 = arith.addf %186, %189 : vector<16x128xf32>
    %191 = arith.addf %172, %190 : vector<16x128xf32>
    %c0_83 = arith.constant 0 : index
    %c0_84 = arith.constant 0 : index
    %c0_85 = arith.constant 0 : index
    %192 = vector.load %arg18[%c0_83, %c0_84, %c0_85] : memref<1x1x128xf32, #tpu.memory_space<vmem>>, vector<1x1x128xf32>
    %193 = vector.shape_cast %192 : vector<1x1x128xf32> to vector<1x128xf32>
    %c0_86 = arith.constant 0 : index
    %c0_87 = arith.constant 0 : index
    %c0_88 = arith.constant 0 : index
    %194 = vector.load %arg19[%c0_86, %c0_87, %c0_88] : memref<1x1x128xf32, #tpu.memory_space<vmem>>, vector<1x1x128xf32>
    %195 = vector.shape_cast %194 : vector<1x1x128xf32> to vector<1x128xf32>
    %cst_89 = arith.constant dense<0.000000e+00> : vector<16xf32>
    %196 = vector.multi_reduction <add>, %191, %cst_89 [1] : vector<16x128xf32> to vector<16xf32>
    %197 = vector.shape_cast %196 : vector<16xf32> to vector<16x1xf32>
    %cst_90 = arith.constant 1.280000e+02 : f32
    %198 = vector.broadcast %cst_90 : f32 to vector<16x1xf32>
    %199 = arith.divf %197, %198 : vector<16x1xf32>
    %200 = vector.broadcast %199 : vector<16x1xf32> to vector<16x128xf32>
    %201 = arith.subf %191, %200 : vector<16x128xf32>
    %202 = arith.mulf %201, %201 : vector<16x128xf32>
    %cst_91 = arith.constant dense<0.000000e+00> : vector<16xf32>
    %203 = vector.multi_reduction <add>, %202, %cst_91 [1] : vector<16x128xf32> to vector<16xf32>
    %204 = vector.shape_cast %203 : vector<16xf32> to vector<16x1xf32>
    %cst_92 = arith.constant 1.280000e+02 : f32
    %205 = vector.broadcast %cst_92 : f32 to vector<16x1xf32>
    %206 = arith.divf %204, %205 : vector<16x1xf32>
    %cst_93 = arith.constant 9.99999996E-13 : f32
    %207 = vector.broadcast %cst_93 : f32 to vector<16x1xf32>
    %208 = arith.addf %206, %207 : vector<16x1xf32>
    %209 = math.rsqrt %208 : vector<16x1xf32>
    %210 = vector.broadcast %209 : vector<16x1xf32> to vector<16x128xf32>
    %211 = arith.mulf %201, %210 : vector<16x128xf32>
    %212 = vector.broadcast %193 : vector<1x128xf32> to vector<16x128xf32>
    %213 = arith.mulf %212, %211 : vector<16x128xf32>
    %214 = vector.broadcast %195 : vector<1x128xf32> to vector<16x128xf32>
    %215 = arith.addf %213, %214 : vector<16x128xf32>
    %216 = vector.shape_cast %215 : vector<16x128xf32> to vector<2x8x128xf32>
    %c0_94 = arith.constant 0 : index
    %c0_95 = arith.constant 0 : index
    %c0_96 = arith.constant 0 : index
    %217 = vector.load %arg20[%c0_94, %c0_95, %c0_96] : memref<2x8x128xf32, #tpu.memory_space<vmem>>, vector<2x8x128xf32>
    tpu.vector_store %arg20[%c0_94, %c0_95, %c0_96], %216 {strides = array<i32>} : memref<2x8x128xf32, #tpu.memory_space<vmem>>, vector<2x8x128xf32>,
    return
  }
  func.func @transform_0(%arg0: i32, %arg1: i32) -> (i32, i32, i32) {
    %c0_i32 = arith.constant 0 : i32
    %c0_i32_0 = arith.constant 0 : i32
    %c0_i32_1 = arith.constant 0 : i32
    return %arg0, %c0_i32, %c0_i32_0 : i32, i32, i32
  }
  func.func @transform_1(%arg0: i32, %arg1: i32) -> (i32, i32, i32) {
    %c0_i32 = arith.constant 0 : i32
    %c0_i32_0 = arith.constant 0 : i32
    %c0_i32_1 = arith.constant 0 : i32
    return %arg0, %c0_i32, %c0_i32_0 : i32, i32, i32
  }
  func.func @transform_2(%arg0: i32, %arg1: i32) -> (i32, i32, i32) {
    %c0_i32 = arith.constant 0 : i32
    %c0_i32_0 = arith.constant 0 : i32
    %c0_i32_1 = arith.constant 0 : i32
    return %arg1, %c0_i32, %c0_i32_0 : i32, i32, i32
  }
  func.func @transform_3(%arg0: i32, %arg1: i32) -> (i32, i32, i32) {
    %c0_i32 = arith.constant 0 : i32
    %c0_i32_0 = arith.constant 0 : i32
    %c0_i32_1 = arith.constant 0 : i32
    return %arg1, %c0_i32, %c0_i32_0 : i32, i32, i32
  }
  func.func @transform_4(%arg0: i32, %arg1: i32) -> (i32, i32, i32) {
    %c0_i32 = arith.constant 0 : i32
    %c0_i32_0 = arith.constant 0 : i32
    %c0_i32_1 = arith.constant 0 : i32
    return %arg1, %c0_i32, %c0_i32_0 : i32, i32, i32
  }
  func.func @transform_5(%arg0: i32, %arg1: i32) -> (i32, i32, i32) {
    %c0_i32 = arith.constant 0 : i32
    %c0_i32_0 = arith.constant 0 : i32
    %c0_i32_1 = arith.constant 0 : i32
    return %arg1, %c0_i32, %c0_i32_0 : i32, i32, i32
  }
  func.func @transform_6(%arg0: i32, %arg1: i32) -> (i32, i32, i32) {
    %c0_i32 = arith.constant 0 : i32
    %c0_i32_0 = arith.constant 0 : i32
    %c0_i32_1 = arith.constant 0 : i32
    return %arg1, %c0_i32, %c0_i32_0 : i32, i32, i32
  }
  func.func @transform_7(%arg0: i32, %arg1: i32) -> (i32, i32, i32) {
    %c0_i32 = arith.constant 0 : i32
    %c0_i32_0 = arith.constant 0 : i32
    %c0_i32_1 = arith.constant 0 : i32
    return %arg1, %c0_i32, %c0_i32_0 : i32, i32, i32
  }
  func.func @transform_8(%arg0: i32, %arg1: i32) -> (i32, i32, i32) {
    %c0_i32 = arith.constant 0 : i32
    %c0_i32_0 = arith.constant 0 : i32
    %c0_i32_1 = arith.constant 0 : i32
    return %arg1, %c0_i32, %c0_i32_0 : i32, i32, i32
  }
  func.func @transform_9(%arg0: i32, %arg1: i32) -> (i32, i32, i32) {
    %c0_i32 = arith.constant 0 : i32
    %c0_i32_0 = arith.constant 0 : i32
    %c0_i32_1 = arith.constant 0 : i32
    return %arg1, %c0_i32, %c0_i32_0 : i32, i32, i32
  }
  func.func @transform_10(%arg0: i32, %arg1: i32) -> (i32, i32, i32) {
    %c0_i32 = arith.constant 0 : i32
    %c0_i32_0 = arith.constant 0 : i32
    %c0_i32_1 = arith.constant 0 : i32
    return %arg1, %c0_i32, %c0_i32_0 : i32, i32, i32
  }
  func.func @transform_11(%arg0: i32, %arg1: i32) -> (i32, i32, i32) {
    %c0_i32 = arith.constant 0 : i32
    %c0_i32_0 = arith.constant 0 : i32
    %c0_i32_1 = arith.constant 0 : i32
    return %arg1, %c0_i32, %c0_i32_0 : i32, i32, i32
  }
  func.func @transform_12(%arg0: i32, %arg1: i32) -> (i32, i32, i32) {
    %c0_i32 = arith.constant 0 : i32
    %c0_i32_0 = arith.constant 0 : i32
    %c0_i32_1 = arith.constant 0 : i32
    return %arg1, %c0_i32, %c0_i32_0 : i32, i32, i32
  }
  func.func @transform_13(%arg0: i32, %arg1: i32) -> (i32, i32, i32) {
    %c0_i32 = arith.constant 0 : i32
    %c0_i32_0 = arith.constant 0 : i32
    %c0_i32_1 = arith.constant 0 : i32
    return %arg1, %c0_i32, %c0_i32_0 : i32, i32, i32
  }
  func.func @transform_14(%arg0: i32, %arg1: i32) -> (i32, i32, i32) {
    %c0_i32 = arith.constant 0 : i32
    %c0_i32_0 = arith.constant 0 : i32
    %c0_i32_1 = arith.constant 0 : i32
    return %arg1, %c0_i32, %c0_i32_0 : i32, i32, i32
  }
  func.func @transform_15(%arg0: i32, %arg1: i32) -> (i32, i32, i32) {
    %c0_i32 = arith.constant 0 : i32
    %c0_i32_0 = arith.constant 0 : i32
    %c0_i32_1 = arith.constant 0 : i32
    return %arg1, %c0_i32, %c0_i32_0 : i32, i32, i32
  }
  func.func @transform_16(%arg0: i32, %arg1: i32) -> (i32, i32, i32) {
    %c0_i32 = arith.constant 0 : i32
    %c0_i32_0 = arith.constant 0 : i32
    %c0_i32_1 = arith.constant 0 : i32
    return %arg1, %c0_i32, %c0_i32_0 : i32, i32, i32
  }
  func.func @transform_17(%arg0: i32, %arg1: i32) -> (i32, i32, i32) {
    %c0_i32 = arith.constant 0 : i32
    %c0_i32_0 = arith.constant 0 : i32
    %c0_i32_1 = arith.constant 0 : i32
    return %arg1, %c0_i32, %c0_i32_0 : i32, i32, i32
  }
  func.func @transform_18(%arg0: i32, %arg1: i32) -> (i32, i32, i32) {
    %c0_i32 = arith.constant 0 : i32
    %c0_i32_0 = arith.constant 0 : i32
    %c0_i32_1 = arith.constant 0 : i32
    return %arg0, %c0_i32, %c0_i32_0 : i32, i32, i32
  }
}

</mosaic_0001>

<bundles_post_ra>
// kernel: tpu_custom_call.1
= control target key start
LH: loop header
LB: loop body
LE: loop exit
PB: predicated region body
PF: predicated region fallthrough
CT: control target
= control target key end

     0   :  { %s5089_s0 = inlined_call_operand.hbm [shape: f32[2,8,128], index: 0, kind: input, shape index: {}]   ;;  %s5090_s1 = inlined_call_operand.vmem [shape: f32[2,1,8], index: 1, kind: input, shape index: {}]   ;;  %s5091_s2 = inlined_call_operand.hbm [shape: bf16[2,128,128], index: 2, kind: input, shape index: {}]   ;;  %s5092_s3 = inlined_call_operand.vmem [shape: f32[2,1,128], index: 3, kind: input, shape index: {}]   ;;  %s5093_s4 = inlined_call_operand.hbm [shape: bf16[2,128,128], index: 4, kind: input, shape index: {}]   ;;  %s5094_s5 = inlined_call_operand.vmem [shape: f32[2,1,128], index: 5, kind: input, shape index: {}]   ;;  %s5095_s6 = inlined_call_operand.hbm [shape: bf16[2,128,128], index: 6, kind: input, shape index: {}]   ;;  %s5096_s7 = inlined_call_operand.vmem [shape: f32[2,1,128], index: 7, kind: input, shape index: {}]   ;;  %s5097_s8 = inlined_call_operand.hbm [shape: bf16[2,128,128], index: 8, kind: input, shape index: {}]   ;;  %s5098_s9 = inlined_call_operand.vmem [shape: f32[2,1,128], index: 9, kind: input, shape index: {}]   ;;  %s5099_s10 = inlined_call_operand.vmem [shape: f32[2,1,128], index: 10, kind: input, shape index: {}]   ;;  %s5100_s11 = inlined_call_operand.vmem [shape: f32[2,1,128], index: 11, kind: input, shape index: {}]   ;;  %s5101_s12 = inlined_call_operand.hbm [shape: bf16[2,128,256], index: 12, kind: input, shape index: {}]   ;;  %s5102_s13 = inlined_call_operand.vmem [shape: f32[2,1,256], index: 13, kind: input, shape index: {}]   ;;  %s5103_s14 = inlined_call_operand.hbm [shape: bf16[2,256,128], index: 14, kind: input, shape index: {}]   ;;  %s5104_s15 = inlined_call_operand.vmem [shape: f32[2,1,128], index: 15, kind: input, shape index: {}]   ;;  %s5105_s16 = inlined_call_operand.vmem [shape: f32[2,1,128], index: 16, kind: input, shape index: {}]   ;;  %s5106_s17 = inlined_call_operand.vmem [shape: f32[2,1,128], index: 17, kind: input, shape index: {}]   ;;  %s5107_s18 = inlined_call_operand.hbm [shape: f32[2,8,128], index: 18, kind: output, shape index: {}]  }
   0x1   :  { %5138 = sst [smem:[#allocation27_spill]] %s5089_s0 }
   0x2   :  { %5139 = sst [smem:[#allocation28_spill]] %s5090_s1 }
   0x3   :  { %5140 = sst [smem:[#allocation29_spill]] %s5091_s2 }
   0x4   :  { %5141 = sst [smem:[#allocation30_spill]] %s5093_s4 }
   0x5   :  { %5142 = sst [smem:[#allocation31_spill]] %s5094_s5 }
   0x6   :  { %5143 = sst [smem:[#allocation32_spill]] %s5095_s6 }
   0x7   :  { %5144 = sst [smem:[#allocation33_spill]] %s5096_s7 }
   0x8   :  { %5145 = sst [smem:[#allocation34_spill]] %s5097_s8 }
   0x9   :  { %5146 = sst [smem:[#allocation35_spill]] %s5098_s9 }
   0xa   :  { %5147 = sst [smem:[#allocation36_spill]] %s5099_s10 }
   0xb   :  { %5148 = sst [smem:[#allocation37_spill]] %s5100_s11 }
   0xc   :  { %5149 = sst [smem:[#allocation38_spill]] %s5101_s12 }
   0xd   :  { %5150 = sst [smem:[#allocation39_spill]] %s5102_s13 }
   0xe   :  { %5151 = sst [smem:[#allocation40_spill]] %s5103_s14 }
   0xf   :  { %5152 = sst [smem:[#allocation41_spill]] %s5104_s15 }
  0x10   :  { %5153 = sst [smem:[#allocation42_spill]] %s5105_s16 }
  0x11   :  { %5154 = sst [smem:[#allocation43_spill]] %s5106_s17 }
  0x12   :  { %5155 = sst [smem:[#allocation44_spill]] %s5107_s18 }
  0x13   :  { %23 = vsyncpa [#allocation3], 0 }
  0x14   :  { %24 = vsyncpa [#allocation6], 0 }
  0x15   :  { %26 = vsyncpa [#allocation6 + $0x1], 0 }
  0x16   :  { %27 = vsyncpa [#allocation9], 0 }
  0x17   :  { %29 = vsyncpa [#allocation9 + $0x1], 0 }
  0x18   :  { %30 = vsyncpa [#allocation12], 0 }
  0x19   :  { %32 = vsyncpa [#allocation12 + $0x1], 0 }
  0x1a   :  { %33 = vsyncpa [#allocation4], 0  ;;  %s4272_s27 = smov 0   ;;  %s4274_s28 = smov 0  }
  0x1b   :  { %s4276_s29 = smov 0   ;;  %s4278_s30 = smov 0  }
  0x1c   :  { %s4280_s0 = smov 0   ;;  %s4282_s19 = smov 0  }
  0x1d LB: > { %5156 = sst [smem:[#allocation20_spill]] %s4139_s28  ;;  %s48_s1 = sadd.s32 1, %s4151_s0  ;;  %s4155_s19 = sphi %s4282_s19, %s39_s19   ;;  %s4151_s0 = sphi %s4280_s0, %s5221_s0   ;;  %s4147_s30 = sphi %s4278_s30, %s5220_s30   ;;  %s4143_s29 = sphi %s4276_s29, %s5219_s29   ;;  %s4139_s28 = sphi %s4274_s28, %s5218_s28   ;;  %s4135_s27 = sphi %s4272_s27, %s5217_s27  }
  0x1e   : > { %5157 = sst [smem:[#allocation21_spill]] %s4143_s29  ;;  %s110_s20 = sadd.s32 1, %s4143_s29 }
  0x1f   : > { %5158 = sst [smem:[#allocation22_spill]] %s4151_s0  ;;  %p49_p0 = scmp.ge.s32.totalorder %s48_s1, 2 }
  0x20   : > { %5159 = sst [smem:[#allocation23_spill]] %s4155_s19  ;;  %p117_p1 = scmp.ne.s32.totalorder %s4143_s29, %s4139_s28 }
  0x21   : > { %p118_p2 = scmp.eq.s32.totalorder %s4155_s19, 0  ;;  %s5223_s1 = smov (%p49_p0, %s48_s1), 0 }
  0x22   : > { %5160 = sst [smem:[#allocation24_spill]] %s5223_s1  ;;  %p3677_p4 = scmp.lt.s32.totalorder %s4155_s19, 2 }
  0x23   : > { %p119_p3 = por %p118_p2, %p117_p1  ;;  %s107_s21 = ssub.s32 %s4151_s0, %s5223_s1 }
  0x24   : > { %s4313_s22 = sand.u32 1, %s4155_s19   ;;  %p108_p5 = scmp.eq.s32.totalorder %s107_s21, 0 }
  0x25   : > { %s5113_s2 = sand.u32 1, %s4143_s29   ;;  %s4317_s23 = sshll.u32 %s4151_s0, 10 }
  0x26   : > { %s4320_s24 = scalar_select %p108_p5, %s4143_s29, %s110_s20  }
  0x27   : > { %s4324_s25 = sshll.u32 %s5113_s2, 6  ;;  %s5162_s17 = sld [smem:[#allocation29_spill]] }
  0x28   : > { %5161 = sst [smem:[#allocation25_spill]] %s4320_s24  ;;  %p4332_p6 = pnand %p3677_p4, %p119_p3 }
  0x29   : > { %s591_s20 = scalar_lea.vmem [#allocation5], %s4324_s25 }
  0x2a   : > { %s5163_s21 = scalar_select %p4332_p6, 1, 0 }
  0x2b   : > { %s598_s1 = sshll.u32 %s591_s20, 4  ;;  %p4344_p8 = pneg %p4332_p6  ;;  %s4337_s1 = int_to_ptr.vmem [resolvable:$true] %s598_s1 }
  0x2d   : > { %s4330_s16 = scalar_lea.hbm %s5162_s17, %s4317_s23  ;;  %s3860_s15 = scalar_lea.hbm %s5162_s17, 2048 }
  0x2e   : > { %s3855_s24 = scalar_lea.hbm %s4330_s16, 1024  ;;  %p3861_p11 = scmp.lt.u32.totalorder %s4330_s16, %s5162_s17 }
  0x2f   : > { %p3856_p7 = scmp.ne.s32.totalorder %s4330_s16, %s3855_s24  ;;  %p3862_p12 = scmp.lt.u32.totalorder %s3860_s15, %s3855_s24 }
  0x30   : > { %s5164_s18 = scalar_select %p4344_p8, 1, 0 }
  0x31   : > { %p3858_p9 = pnand %p4344_p8, %p3856_p7  ;;  %p3863_p13 = por %p3862_p12, %p3861_p11 }
  0x32   : > { %p3864_p0 = scmp.lt.u32.totalorder %s3855_s24, %s4330_s16 }
  0x33   : > { %p3859_p10 = pneg %p3858_p9 }
  0x34   : > { %p3865_p1 = por %p3864_p0, %p3863_p13 }
  0x36   : > { %p3866_p2 = pnand %p3865_p1, %p3859_p10 }
  0x38   : > { %3869 = shalt.err (!%p3866_p2)
}
  0x39   : > { %s3870_s2 = scalar_lea.vmem %s4337_s1, 1024  ;;  %s4157_s13 = smov [#allocation5]  }
  0x3a   : > { %p3871_p3 = scmp.ne.s32.totalorder %s4337_s1, %s3870_s2  ;;  %s3875_s26 = sshll.u32 %s4157_s13, 4  ;;  %s3876_s26 = int_to_ptr.vmem [resolvable:$false] %s3875_s26 }
  0x3b   : > { %s3877_s11 = scalar_lea.vmem %s3876_s26, 2048  ;;  %p3878_p7 = scmp.lt.s32.totalorder %s4337_s1, %s3876_s26 }
  0x3c   : > { %p3873_p4 = pnand %p3871_p3, %p4344_p8  ;;  %p3879_p9 = scmp.lt.s32.totalorder %s3877_s11, %s3870_s2 }
  0x3e   : > { %p3874_p5 = pneg %p3873_p4  ;;  %p3880_p11 = por %p3879_p9, %p3878_p7 }
  0x40   : > { %p3881_p12 = pnand %p3880_p11, %p3874_p5 }
  0x42   : > { %3884 = shalt.err (!%p3881_p12)
}
  0x43   : > { %s5116_s15 = smov 64   ;;  %s5118_s24 = smov 4  }
  0x44   : > { %s5165_s20 = scalar_lea.sflag [#allocation6], %s4313_s22  ;;  %s5166_s6 = sld [smem:[#allocation32_spill]] }
  0x45   : > { %3660 = dma.hbm_to_vmem [thread:$0]  (!%p4332_p6), %s4330_s16, 1024, %s4337_s1, %s5165_s20, %s5116_s15, %s5116_s15, %s5118_s24  }
  0x46   : > { %s645_s11 = scalar_lea.vmem [#allocation8], %s4324_s25  ;;  %s5115_s10 = scalar_lea.sflag [#allocation9], %s4313_s22 }
  0x47   : > { %s652_s17 = sshll.u32 %s645_s11, 4  ;;  %s4379_s17 = int_to_ptr.vmem [resolvable:$true] %s652_s17 }
  0x4a   : > { %s4376_s26 = scalar_lea.hbm %s5166_s6, %s4317_s23  ;;  %s3890_s20 = scalar_lea.hbm %s5166_s6, 2048 }
  0x4b   : > { %s3885_s9 = scalar_lea.hbm %s4376_s26, 1024  ;;  %p3891_p1 = scmp.lt.u32.totalorder %s4376_s26, %s5166_s6 }
  0x4c   : > { %p3886_p10 = scmp.ne.s32.totalorder %s4376_s26, %s3885_s9  ;;  %p3892_p2 = scmp.lt.u32.totalorder %s3890_s20, %s3885_s9 }
  0x4d   : > { %p3894_p4 = scmp.lt.u32.totalorder %s3885_s9, %s4376_s26 }
  0x4e   : > { %p3888_p13 = pnand %p3886_p10, %p4344_p8  ;;  %p3893_p3 = por %p3892_p2, %p3891_p1 }
  0x50   : > { %p3889_p0 = pneg %p3888_p13  ;;  %p3895_p5 = por %p3894_p4, %p3893_p3 }
  0x52   : > { %p3896_p7 = pnand %p3895_p5, %p3889_p0 }
  0x54   : > { %3899 = shalt.err (!%p3896_p7)
}
  0x55   : > { %s3900_s11 = scalar_lea.vmem %s4379_s17, 1024  ;;  %s4160_s16 = smov [#allocation8]  }
  0x56   : > { %p3901_p9 = scmp.ne.s32.totalorder %s4379_s17, %s3900_s11  ;;  %s3905_s1 = sshll.u32 %s4160_s16, 4  ;;  %s3906_s1 = int_to_ptr.vmem [resolvable:$false] %s3905_s1 }
  0x57   : > { %s3907_s2 = scalar_lea.vmem %s3906_s1, 2048  ;;  %p3908_p10 = scmp.lt.s32.totalorder %s4379_s17, %s3906_s1 }
  0x58   : > { %p3903_p11 = pnand %p3901_p9, %p4344_p8  ;;  %p3909_p13 = scmp.lt.s32.totalorder %s3907_s2, %s3900_s11 }
  0x5a   : > { %p3904_p12 = pneg %p3903_p11  ;;  %p3910_p1 = por %p3909_p13, %p3908_p10 }
  0x5c   : > { %p3911_p2 = pnand %p3910_p1, %p3904_p12 }
  0x5e   : > { %3914 = shalt.err (!%p3911_p2)
}
  0x5f   : > { %3666 = dma.hbm_to_vmem [thread:$0]  (!%p4332_p6), %s4376_s26, 1024, %s4379_s17, %s5115_s10, %s5116_s15, %s5116_s15, %s5118_s24  }
  0x60   : > { %s5167_s9 = sand.u32 1, %s4143_s29   ;;  %s3350_s13 = sshll.u32 %s4151_s0, 11 }
  0x61   : > { %s4410_s20 = sshll.u32 %s5167_s9, 7  ;;  %s5168_s12 = sld [smem:[#allocation38_spill]] }
  0x62   : > { %s711_s2 = scalar_lea.vmem [#allocation11], %s4410_s20  ;;  %s5120_s17 = scalar_lea.sflag [#allocation12], %s4313_s22 }
  0x63   : > { %s718_s6 = sshll.u32 %s711_s2, 4  ;;  %s4421_s6 = int_to_ptr.vmem [resolvable:$true] %s718_s6 }
  0x67   : > { %s4418_s1 = scalar_lea.hbm %s5168_s12, %s3350_s13  ;;  %s3920_s11 = scalar_lea.hbm %s5168_s12, 4096 }
  0x68   : > { %s3915_s26 = scalar_lea.hbm %s4418_s1, 2048  ;;  %p3921_p5 = scmp.lt.u32.totalorder %s4418_s1, %s5168_s12 }
  0x69   : > { %p3916_p0 = scmp.ne.s32.totalorder %s4418_s1, %s3915_s26  ;;  %p3922_p7 = scmp.lt.u32.totalorder %s3920_s11, %s3915_s26 }
  0x6a   : > { %p3924_p11 = scmp.lt.u32.totalorder %s3915_s26, %s4418_s1 }
  0x6b   : > { %p3918_p3 = pnand %p3916_p0, %p4344_p8  ;;  %p3923_p9 = por %p3922_p7, %p3921_p5 }
  0x6d   : > { %p3919_p4 = pneg %p3918_p3  ;;  %p3925_p12 = por %p3924_p11, %p3923_p9 }
  0x6f   : > { %p3926_p10 = pnand %p3925_p12, %p3919_p4 }
  0x71   : > { %3929 = shalt.err (!%p3926_p10)
}
  0x72   : > { %s3930_s2 = scalar_lea.vmem %s4421_s6, 2048  ;;  %s4161_s10 = smov [#allocation11]  }
  0x73   : > { %p3931_p13 = scmp.ne.s32.totalorder %s4421_s6, %s3930_s2  ;;  %s3935_s9 = sshll.u32 %s4161_s10, 4  ;;  %s3936_s9 = int_to_ptr.vmem [resolvable:$false] %s3935_s9 }
  0x74   : > { %s3937_s15 = scalar_lea.vmem %s3936_s9, 4096  ;;  %p3938_p0 = scmp.lt.s32.totalorder %s4421_s6, %s3936_s9 }
  0x75   : > { %p3933_p1 = pnand %p3931_p13, %p4344_p8  ;;  %p3939_p3 = scmp.lt.s32.totalorder %s3937_s15, %s3930_s2 }
  0x77   : > { %p3934_p2 = pneg %p3933_p1  ;;  %p3940_p5 = por %p3939_p3, %p3938_p0 }
  0x79   : > { %p3941_p7 = pnand %p3940_p5, %p3934_p2 }
  0x7b   : > { %3944 = shalt.err (!%p3941_p7)
}
  0x7c   : > { %s5121_s26 = smov 128   ;;  %s5122_s11 = smov 8  }
  0x7d   : > { %3672 = dma.hbm_to_vmem [thread:$0]  (!%p4332_p6), %s4418_s1, 2048, %s4421_s6, %s5120_s17, %s5121_s26, %s5121_s26, %s5122_s11  }
  0x7e   : > { %s5169_s14 = sld [smem:[#allocation40_spill]]  ;;  %s739_s9 = scalar_lea.vmem [#allocation13], %s4410_s20 }
  0x7f   : > { %s746_s15 = sshll.u32 %s739_s9, 4  ;;  %s4461_s24 = sadd.s32 4294967295, %s4155_s19   ;;  %s4458_s15 = int_to_ptr.vmem [resolvable:$true] %s746_s15 }
  0x80   : > { %5170 = sst [smem:[#allocation26_spill]] %s4461_s24  ;;  %p123_p4 = scmp.ne.s32.totalorder %s4139_s28, %s4135_s27 }
  0x81   : > { %p5124_p9 = scmp.eq.s32.totalorder %s4461_s24, 0  ;;  %p3215_p11 = scmp.ge.s32.totalorder %s4155_s19, 1 }
  0x82   : > { %p550_p12 = scmp.lt.s32.totalorder %s4155_s19, 3  ;;  %s5173_s4 = sld [smem:[#allocation30_spill]] }
  0x83   : > { %p4470_p10 = por %p5124_p9, %p123_p4  ;;  %s618_s9 = scalar_lea.vmem [#allocation7], %s4324_s25 }
  0x84   : > { %s4455_s10 = scalar_lea.hbm %s5169_s14, %s3350_s13  ;;  %p4474_p13 = pnand %p3215_p11, %p550_p12 }
  0x85   : > { %s5171_s6 = scalar_select %p4470_p10, 1, 0 }
  0x86   : > { %s5172_s20 = scalar_select %p4474_p13, 1, 0 }
  0x87   : > { %s4164_s13 = smov [#allocation2]   ;;  %p3653_p1 = pneg %p4474_p13 }
  0x88   : > { %s565_s1 = sshll.u32 %s4164_s13, 4  ;;  %s4486_s2 = scalar_lea.hbm %s5173_s4, %s4317_s23  ;;  %s4480_s1 = int_to_ptr.vmem [resolvable:$true] %s565_s1 }
  0x89   : > { %s625_s17 = sshll.u32 %s618_s9, 4  ;;  %p4491_p2 = pnand %p3653_p1, %p5124_p9  ;;  %s4495_s17 = int_to_ptr.vmem [resolvable:$true] %s625_s17 }
  0x8a   : > { %s3945_s13 = scalar_lea.hbm %s4486_s2, 1024  ;;  %s3950_s11 = scalar_lea.hbm %s5173_s4, 2048 }
  0x8b   : > { %s5174_s26 = scalar_select %p4491_p2, 1, 0 }
  0x8c   : > { %p3946_p0 = scmp.ne.s32.totalorder %s4486_s2, %s3945_s13  ;;  %p3951_p7 = scmp.lt.u32.totalorder %s4486_s2, %s5173_s4 }
  0x8d   : > { %p3952_p4 = scmp.lt.u32.totalorder %s3950_s11, %s3945_s13  ;;  %p3954_p12 = scmp.lt.u32.totalorder %s3945_s13, %s4486_s2 }
  0x8e   : > { %p3948_p3 = pnand %p3946_p0, %p4344_p8 }
  0x8f   : > { %p3953_p11 = por %p3952_p4, %p3951_p7 }
  0x90   : > { %p3949_p5 = pneg %p3948_p3 }
  0x91   : > { %p3955_p1 = por %p3954_p12, %p3953_p11 }
  0x93   : > { %p3956_p9 = pnand %p3955_p1, %p3949_p5 }
  0x95   : > { %3959 = shalt.err (!%p3956_p9)
}
  0x96   : > { %s3960_s9 = scalar_lea.vmem %s4495_s17, 1024  ;;  %s4165_s27 = smov [#allocation7]  }
  0x97   : > { %p3961_p0 = scmp.ne.s32.totalorder %s4495_s17, %s3960_s9  ;;  %s3965_s16 = sshll.u32 %s4165_s27, 4  ;;  %s3966_s16 = int_to_ptr.vmem [resolvable:$false] %s3965_s16 }
  0x98   : > { %s3967_s12 = scalar_lea.vmem %s3966_s16, 2048  ;;  %p3968_p13 = scmp.lt.s32.totalorder %s4495_s17, %s3966_s16 }
  0x99   : > { %p3963_p3 = pnand %p3961_p0, %p4344_p8  ;;  %p3969_p2 = scmp.lt.s32.totalorder %s3967_s12, %s3960_s9 }
  0x9b   : > { %p3964_p10 = pneg %p3963_p3  ;;  %p3970_p7 = por %p3969_p2, %p3968_p13 }
  0x9d   : > { %p3971_p4 = pnand %p3970_p7, %p3964_p10 }
  0x9f   : > { %3974 = shalt.err (!%p3971_p4)
}
  0xa0   : > { %s5175_s0 = smov 4   ;;  %s5176_s11 = smov 64  }
  0xa1   : > { %s5177_s13 = scalar_lea.sflag [#allocation6], %s4313_s22  ;;  %s5178_s29 = sld [smem:[#allocation27_spill]] }
  0xa2   : > { %3663 = dma.hbm_to_vmem [thread:$0]  (!%p4332_p6), %s4486_s2, 1024, %s4495_s17, %s5177_s13, %s5176_s11, %s5176_s11, %s5175_s0  }
  0xa3   : > { %p5180_p10 = scmp.ne.s32.totalorder %s5174_s26, 0 }
  0xa5   : > { %p3977_p13 = pneg %p5180_p10 }
  0xa7   : > { %s5179_s7 = smov %s5178_s29  ;;  %s3975_s19 = scalar_lea.hbm %s5178_s29, 256 }
  0xa8   : > { %p3976_p9 = scmp.ne.s32.totalorder %s5179_s7, %s3975_s19  ;;  %p3982_p11 = scmp.lt.u32.totalorder %s3975_s19, %s5179_s7 }
  0xaa   : > { %p3978_p2 = pnand %p3977_p13, %p3976_p9 }
  0xac   : > { %p3979_p5 = pneg %p3978_p2 }
  0xae   : > { %p3984_p12 = pnand %p3982_p11, %p3979_p5 }
  0xb0   : > { %3987 = shalt.err (!%p3984_p12)
}
  0xb1   : > { %s3988_s17 = scalar_lea.vmem %s4480_s1, 256  ;;  %p3996_p7 = scmp.lt.s32.totalorder %s4480_s1, %s4480_s1 }
  0xb2   : > { %p3989_p1 = scmp.ne.s32.totalorder %s4480_s1, %s3988_s17  ;;  %p3997_p4 = scmp.lt.s32.totalorder %s3988_s17, %s3988_s17 }
  0xb4   : > { %p3991_p0 = pnand %p3989_p1, %p3977_p13  ;;  %p3998_p6 = por %p3997_p4, %p3996_p7 }
  0xb6   : > { %p3992_p3 = pneg %p3991_p0 }
  0xb8   : > { %p3999_p8 = pnand %p3998_p6, %p3992_p3 }
  0xba   : > { %4002 = shalt.err (!%p3999_p8)
}
  0xbb   : > { %s5181_s4 = smov 8   ;;  %s5182_s5 = smov 128  }
  0xbc   : > { %3656 = dma.hbm_to_vmem [thread:$0]  (!%p5180_p10), %s5179_s7, 256, %s4480_s1, [#allocation3], %s5182_s5, %s5182_s5, %s5181_s4  }
  0xbd   : > { %s5183_s8 = sld [smem:[#allocation34_spill]]  ;;  %s672_s26 = scalar_lea.vmem [#allocation10], %s4324_s25 }
  0xbe   : > { %s679_s16 = sshll.u32 %s672_s26, 4  ;;  %p5184_p8 = scmp.ne.s32.totalorder %s5164_s18, 0  ;;  %s4554_s16 = int_to_ptr.vmem [resolvable:$true] %s679_s16 }
  0xc3   : > { %s4551_s27 = scalar_lea.hbm %s5183_s8, %s4317_s23  ;;  %s4008_s17 = scalar_lea.hbm %s5183_s8, 2048 }
  0xc4   : > { %s4003_s9 = scalar_lea.hbm %s4551_s27, 1024  ;;  %p4009_p10 = scmp.lt.u32.totalorder %s4551_s27, %s5183_s8 }
  0xc5   : > { %p4004_p6 = scmp.ne.s32.totalorder %s4551_s27, %s4003_s9  ;;  %p4010_p2 = scmp.lt.u32.totalorder %s4008_s17, %s4003_s9 }
  0xc6   : > { %p4012_p11 = scmp.lt.u32.totalorder %s4003_s9, %s4551_s27 }
  0xc7   : > { %p4006_p9 = pnand %p4004_p6, %p5184_p8  ;;  %p4011_p5 = por %p4010_p2, %p4009_p10 }
  0xc9   : > { %p4007_p13 = pneg %p4006_p9  ;;  %p4013_p12 = por %p4012_p11, %p4011_p5 }
  0xcb   : > { %p4014_p1 = pnand %p4013_p12, %p4007_p13 }
  0xcd   : > { %4017 = shalt.err (!%p4014_p1)
}
  0xce   : > { %s4018_s25 = scalar_lea.vmem %s4554_s16, 1024  ;;  %s4166_s5 = smov [#allocation10]  }
  0xcf   : > { %p4019_p0 = scmp.ne.s32.totalorder %s4554_s16, %s4018_s25  ;;  %s4023_s29 = sshll.u32 %s4166_s5, 4  ;;  %s4024_s29 = int_to_ptr.vmem [resolvable:$false] %s4023_s29 }
  0xd0   : > { %s4025_s19 = scalar_lea.vmem %s4024_s29, 2048  ;;  %p4026_p4 = scmp.lt.s32.totalorder %s4554_s16, %s4024_s29 }
  0xd1   : > { %p4021_p3 = pnand %p4019_p0, %p5184_p8  ;;  %p4027_p6 = scmp.lt.s32.totalorder %s4025_s19, %s4018_s25 }
  0xd3   : > { %p4022_p7 = pneg %p4021_p3  ;;  %p4028_p9 = por %p4027_p6, %p4026_p4 }
  0xd5   : > { %p4029_p10 = pnand %p4028_p9, %p4022_p7 }
  0xd7   : > { %4032 = shalt.err (!%p4029_p10)
}
  0xd8   : > { %p5185_p13 = scmp.ne.s32.totalorder %s5163_s21, 0  ;;  %s5186_s2 = scalar_lea.sflag [#allocation9], %s4313_s22 }
  0xd9   : > { %s4033_s13 = scalar_lea.hbm %s4455_s10, 2048  ;;  %s4038_s12 = scalar_lea.hbm %s5169_s14, 4096 }
  0xda   : > { %3669 = dma.hbm_to_vmem [thread:$0]  (!%p5185_p13), %s4551_s27, 1024, %s4554_s16, %s5186_s2, %s5176_s11, %s5176_s11, %s5175_s0  }
  0xdb   : > { %p4034_p2 = scmp.ne.s32.totalorder %s4455_s10, %s4033_s13  ;;  %p4039_p12 = scmp.lt.u32.totalorder %s4455_s10, %s5169_s14 }
  0xdc   : > { %p4040_p1 = scmp.lt.u32.totalorder %s4038_s12, %s4033_s13  ;;  %p4042_p3 = scmp.lt.u32.totalorder %s4033_s13, %s4455_s10 }
  0xdd   : > { %p4036_p5 = pnand %p4034_p2, %p5184_p8 }
  0xde   : > { %p4041_p0 = por %p4040_p1, %p4039_p12 }
  0xdf   : > { %p4037_p11 = pneg %p4036_p5 }
  0xe0   : > { %p4043_p7 = por %p4042_p3, %p4041_p0 }
  0xe2   : > { %p4044_p4 = pnand %p4043_p7, %p4037_p11 }
  0xe4   : > { %4047 = shalt.err (!%p4044_p4)
}
  0xe5   : > { %s4048_s27 = scalar_lea.vmem %s4458_s15, 2048  ;;  %s4167_s16 = smov [#allocation13]  }
  0xe6   : > { %p4049_p6 = scmp.ne.s32.totalorder %s4458_s15, %s4048_s27  ;;  %s4053_s4 = sshll.u32 %s4167_s16, 4  ;;  %s4054_s4 = int_to_ptr.vmem [resolvable:$false] %s4053_s4 }
  0xe7   : > { %s4055_s23 = scalar_lea.vmem %s4054_s4, 4096  ;;  %p4056_p2 = scmp.lt.s32.totalorder %s4458_s15, %s4054_s4 }
  0xe8   : > { %p4051_p9 = pnand %p4049_p6, %p5184_p8  ;;  %p4057_p5 = scmp.lt.s32.totalorder %s4055_s23, %s4048_s27 }
  0xea   : > { %p4052_p10 = pneg %p4051_p9  ;;  %p4058_p12 = por %p4057_p5, %p4056_p2 }
  0xec   : > { %p4059_p1 = pnand %p4058_p12, %p4052_p10 }
  0xee   : > { %4062 = shalt.err (!%p4059_p1)
}
  0xef   : > { %s5187_s25 = scalar_lea.sflag [#allocation12], %s4313_s22  ;;  %p5188_p8 = scmp.ne.s32.totalorder %s5172_s20, 0 }
  0xf0   : > { %3675 = dma.hbm_to_vmem [thread:$0]  (!%p5185_p13), %s4455_s10, 2048, %s4458_s15, %s5187_s25, %s5176_s11, %s5176_s11, %s5175_s0  }
  0xf1   : > { %776 = sbr.rel (%p5188_p8) target bundleno = 4688 (0x1250), region = 92  ;;  %p5189_p11 = scmp.eq.s32.totalorder (!%p5188_p8), %s4461_s24, 0 }
  0xf8   : > { %4114 = dma.done.wait (%p5189_p11), [#allocation3], 256   ;;  %p5190_p0 = pmov %p5189_p11 }
  0xf9   : > { %s782_s21 = sand.u32 1, %s4461_s24   ;;  %s784_s18 = sand.u32 1, %s4139_s28  }
  0xfa   : > { %4116 = vsyncadd (%p5190_p0), [#allocation3], 4294967040  ;;  %s3239_s5 = sshll.u32 %s784_s18, 6  ;;  %s783_s29 = scalar_lea.sflag [#allocation6], %s782_s21 }
  0xfb   : > { %s4616_s22 = scalar_lea.vmem [#allocation5], %s3239_s5  ;;  %p5191_p3 = scmp.ne.s32.totalorder %s5171_s6, 0 }
  0xfd   : > { %4118 = dma.done.wait (%p5191_p3), %s783_s29, 2048  }
  0xfe   : > { %4120 = vsyncadd (%p5191_p3), %s783_s29, 4294965248  ;;  %s4622_s10 = scalar_lea.vmem [#allocation7], %s3239_s5  ;;  %s801_s15 = scalar_lea.sflag [#allocation9], %s782_s21 }
  0xff   : > { %s4624_s20 = scalar_lea.vmem [#allocation8], %s3239_s5 }
 0x100   : > { %4122 = dma.done.wait (%p5191_p3), %s801_s15, 2048  }
 0x101   : > { %4124 = vsyncadd (%p5191_p3), %s801_s15, 4294965248  ;;  %s3243_s0 = sshll.u32 %s784_s18, 7  ;;  %s4630_s11 = scalar_lea.vmem [#allocation10], %s3239_s5 }
 0x102   : > { %s819_s19 = scalar_lea.sflag [#allocation12], %s782_s21  ;;  %s4632_s2 = scalar_lea.vmem [#allocation11], %s3243_s0 }
 0x103   : > { %4126 = dma.done.wait (%p5191_p3), %s819_s19, 4096  }
 0x104   : > { %4128 = vsyncadd (%p5191_p3), %s819_s19, 4294963200  ;;  %p945_p13 = scmp.lt.s32.totalorder %s4147_s30, 1  ;;  %s5193_s23 = sld [smem:[#allocation33_spill]] }
 0x105   : > { %s5196_s14 = sld [smem:[#allocation37_spill]]  ;;  %s5197_s1 = sld [smem:[#allocation41_spill]] }
 0x106   : > { %s4640_s13 = scalar_select %p945_p13, %s4147_s30, 1 }
 0x107   : > { %s5198_s4 = sld [smem:[#allocation39_spill]]  ;;  %s5199_s5 = sld [smem:[#allocation42_spill]] }
 0x108   : > { %s3245_s28 = sshll.u32 %s4640_s13, 1  ;;  %s5200_s26 = sld [smem:[#allocation43_spill]] }
 0x109   : > { %s4684_s7 = scalar_lea.vmem [#allocation13], %s3243_s0  ;;  %p3246_p7 = scmp.ne.s32.totalorder %s4147_s30, 0 }
 0x10a   : > { %s953_s25 = scalar_lea.vmem %s5193_s23, %s4640_s13  ;;  %v982_v0 = vld [vmem:[#allocation2] sm:$0xff] (!%p3246_p7)  ;;  %v983_v1 = vld [vmem:[#allocation2 + $0x8] sm:$0xff] (!%p3246_p7) }
 0x10b   : > { %s962_s6 = scalar_lea.vmem %s5196_s14, %s4640_s13  ;;  %s969_s17 = scalar_lea.vmem %s5197_s1, %s4640_s13  ;;  %984 = vst [vmem:[#allocation14] sm:$0xff] (!%p3246_p7), %v982_v0  ;;  %985 = vst [vmem:[#allocation14 + $0x8] sm:$0xff] (!%p3246_p7), %v983_v1 }
 0x10c   : > { %981 = sbr.rel (%p3246_p7) target bundleno = 275 (0x113), region = 124 }
 0x10d   : > { %s4674_s23 = scalar_lea.vmem %s5198_s4, %s3245_s28  ;;  %s972_s29 = scalar_lea.vmem %s5199_s5, %s4640_s13 }
 0x10e   : > { %s975_s9 = scalar_lea.vmem %s5200_s26, %s4640_s13 }
 0x113 PF: > { %v3743_v2 = vld [vmem:[%s4622_s10] sm:$0xff]   ;;  %v4168_v3 = vmov 0.0   ;;  %v3744_v4 = vld [vmem:[%s4622_s10 + $0x8] sm:$0xff]   ;;  %vm4169_vm0 = vmmov 0   ;;  %v3746_v7 = vld [vmem:[%s4622_s10 + $0x10] sm:$0xff]   ;;  %s5201_s28 = sld [smem:[#allocation31_spill]] }
 0x114   : > { %3465 = vmatprep.subr.bf16.mxu1 %v4168_v3  ;;  %3445 = vmatprep.subr.bf16.mxu0 %v4168_v3  ;;  %v3745_v5 = vld [vmem:[%s4616_s22] sm:$0xff]   ;;  %v3747_v6 = vld [vmem:[%s4616_s22 + $0x8] sm:$0xff]   ;;  %v3749_v8 = vld [vmem:[%s4616_s22 + $0x10] sm:$0xff]   ;;  %vm1361_vm1 = vcmask 261120   ;;  %s5204_s12 = sld [smem:[#allocation28_spill]]  ;;  %vm1458_vm2 = vcmask 64512  }
 0x115   : > { %3466 = vmatpush3.bf16.msra.mxu1 %v3743_v2  ;;  %3481 = vmatprep.mubr.msk.bf16.mxu1 %vm4169_vm0, %v4168_v3  ;;  %v3748_v9 = vld [vmem:[%s4622_s10 + $0x18] sm:$0xff]   ;;  %v3750_v11 = vld [vmem:[%s4622_s10 + $0x20] sm:$0xff]   ;;  %v3752_v12 = vld [vmem:[%s4622_s10 + $0x28] sm:$0xff]   ;;  %s4170_s16 = smov 96   ;;  %vm1486_vm3 = vcmask 1043456   ;;  %s4172_s5 = smov 32  }
 0x116   : > { %3467 = vmatprep.subr.bf16.mxu1 %v4168_v3  ;;  %3461 = vmatprep.mubr.msk.bf16.mxu0 %vm4169_vm0, %v4168_v3  ;;  %v3751_v10 = vld [vmem:[%s4616_s22 + $0x18] sm:$0xff]   ;;  %v3753_v13 = vld [vmem:[%s4616_s22 + $0x20] sm:$0xff]   ;;  %v3755_v14 = vld [vmem:[%s4616_s22 + $0x28] sm:$0xff]   ;;  %s5206_s26 = sld [smem:[#allocation35_spill]]  ;;  %s5208_s14 = sld [smem:[#allocation36_spill]] }
 0x117   : > { %3446 = vmatpush3.bf16.msra.mxu0 %v3745_v5  ;;  %v3754_v15 = vld [vmem:[%s4622_s10 + $0x30] sm:$0xff]   ;;  %v3756_v17 = vld [vmem:[%s4622_s10 + $0x38] sm:$0xff]   ;;  %v4719_v18 = vld [vmem:[#allocation14] sm:$0xff]  ;;  %s5203_s10 = scalar_lea.vmem %s5092_s3, %s4640_s13  ;;  %s4174_s4 = smov [#allocation14]  }
 0x118   : > { %3447 = vmatprep.subr.bf16.mxu0 %v4168_v3  ;;  %v3757_v16 = vld [vmem:[%s4616_s22 + $0x30] sm:$0xff]   ;;  %v4721_v19 = vld [vmem:[#allocation14 + $0x8] sm:$0xff]  ;;  %v3758_v20 = vld [vmem:[%s4616_s22 + $0x38] sm:$0xff]   ;;  %s2925_s21 = sshll.u32 %s4174_s4, 4  ;;  %s2926_s21 = int_to_ptr.vmem [resolvable:$true] %s2925_s21 }
 0x119   : > { %3468 = vmatpush3.bf16.msra.mxu1 %v3744_v4  ;;  %v988_v21 = vpack.c.bf16 %v4721_v19, %v4719_v18  ;;  %s5202_s30 = scalar_lea.vmem %s5201_s28, %s4640_s13  ;;  %v3247_v27 = vld [vmem:[%s5203_s10] ss:$0 sm:$0xff]  ;;  %v3759_v42 = vld [vmem:[%s4624_s20] sm:$0xff]   ;;  %v3760_v43 = vld [vmem:[%s4624_s20 + $0x8] sm:$0xff]   ;;  %p4070_p2 = scmp.lt.s32.totalorder %s2926_s21, %s2926_s21 }
 0x11a   : > { %3469 = vmatprep.subr.bf16.mxu1 %v4168_v3  ;;  %v3256_v22 = vld [vmem:[%s5202_s30] ss:$0 sm:$0xff]  ;;  %v3762_v45 = vld [vmem:[%s4624_s20 + $0x18] sm:$0xff]   ;;  %v3763_v46 = vld [vmem:[%s4624_s20 + $0x20] sm:$0xff]  }
 0x11b   : > { %3448 = vmatpush3.bf16.msra.mxu0 %v3747_v6  ;;  %v3761_v44 = vld [vmem:[%s4624_s20 + $0x10] sm:$0xff]   ;;  %v3764_v47 = vld [vmem:[%s4624_s20 + $0x28] sm:$0xff]   ;;  %v3766_v49 = vld [vmem:[%s4624_s20 + $0x38] sm:$0xff]  }
 0x11c   : > { %3449 = vmatprep.subr.bf16.mxu0 %v4168_v3  ;;  %v3765_v48 = vld [vmem:[%s4624_s20 + $0x30] sm:$0xff]   ;;  %s5209_s28 = scalar_lea.vmem %s5208_s14, %s4640_s13 }
 0x11d   : > { %3470 = vmatpush3.bf16.msra.mxu1 %v3746_v7  ;;  %v4788_v51 = vld [vmem:[%s5204_s12] ss:$0 sm:$0xff]  ;;  %v4795_v59 = vld [vmem:[%s5204_s12 + $0x1] ss:$0 sm:$0xff] }
 0x11e   : > { %3471 = vmatprep.subr.bf16.mxu1 %v4168_v3 }
 0x11f   : > { %3450 = vmatpush3.bf16.msra.mxu0 %v3749_v8 }
 0x120   : > { %3451 = vmatprep.subr.bf16.mxu0 %v4168_v3 }
 0x121   : > { %3472 = vmatpush3.bf16.msra.mxu1 %v3748_v9 }
 0x122   : > { %3473 = vmatprep.subr.bf16.mxu1 %v4168_v3 }
 0x123   : > { %3452 = vmatpush3.bf16.msra.mxu0 %v3751_v10 }
 0x124   : > { %3453 = vmatprep.subr.bf16.mxu0 %v4168_v3 }
 0x125   : > { %3474 = vmatpush3.bf16.msra.mxu1 %v3750_v11  ;;  %v3265_v11 = vld [vmem:[%s953_s25] ss:$0 sm:$0xff]  ;;  %s4171_s25 = smov 64  }
 0x126   : > { %3475 = vmatprep.subr.bf16.mxu1 %v4168_v3 }
 0x127   : > { %3454 = vmatpush3.bf16.msra.mxu0 %v3753_v13 }
 0x128   : > { %3455 = vmatprep.subr.bf16.mxu0 %v4168_v3 }
 0x129   : > { %3476 = vmatpush3.bf16.msra.mxu1 %v3752_v12 }
 0x12a   : > { %3477 = vmatprep.subr.bf16.mxu1 %v4168_v3 }
 0x12b   : > { %3456 = vmatpush3.bf16.msra.mxu0 %v3755_v14 }
 0x12c   : > { %3457 = vmatprep.subr.bf16.mxu0 %v4168_v3 }
 0x12d   : > { %3478 = vmatpush3.bf16.msra.mxu1 %v3754_v15 }
 0x12e   : > { %3479 = vmatprep.subr.bf16.mxu1 %v4168_v3 }
 0x12f   : > { %3458 = vmatpush3.bf16.msra.mxu0 %v3757_v16 }
 0x130   : > { %3459 = vmatprep.subr.bf16.mxu0 %v4168_v3 }
 0x131   : > { %3480 = vmatpush3.bf16.msra.mxu1 %v3756_v17 }
 0x132   : > { %3505 = vmatprep.subr.bf16.mxu1 %v4168_v3 }
 0x133   : > { %3460 = vmatpush3.bf16.msra.mxu0 %v3758_v20 }
 0x134   : > { %3482 = vmatmul.mubr.bf16.vlgmr.msra.gmra.mrb[0].mxu1 %v988_v21  ;;  %3485 = vmatprep.subr.bf16.mxu0 %v4168_v3 }
 0x135   : > { %3507 = vmatprep.mubr.msk.bf16.mxu1 %vm4169_vm0, %v4168_v3 }
 0x136   : > { %3462 = vmatmul.mubr.bf16.vlgmr.msra.gmra.mrb[0].mxu0 %v988_v21 }
 0x137   : > { %3501 = vmatprep.mubr.msk.bf16.mxu0 %vm4169_vm0, %v4168_v3  ;;  %3486 = vmatpush3.bf16.msra.mxu0 %v3759_v42 }
 0x138   : > { %3487 = vmatprep.subr.bf16.mxu0 %v4168_v3 }
 0x13b   : > { %3488 = vmatpush3.bf16.msra.mxu0 %v3760_v43 }
 0x13c   : > { %3489 = vmatprep.subr.bf16.mxu0 %v4168_v3 }
 0x13f   : > { %3490 = vmatpush3.bf16.msra.mxu0 %v3761_v44 }
 0x140   : > { %3491 = vmatprep.subr.bf16.mxu0 %v4168_v3 }
 0x143   : > { %3492 = vmatpush3.bf16.msra.mxu0 %v3762_v45 }
 0x144   : > { %3493 = vmatprep.subr.bf16.mxu0 %v4168_v3 }
 0x147   : > { %3494 = vmatpush3.bf16.msra.mxu0 %v3763_v46 }
 0x148   : > { %3495 = vmatprep.subr.bf16.mxu0 %v4168_v3 }
 0x14b   : > { %3496 = vmatpush3.bf16.msra.mxu0 %v3764_v47 }
 0x14c   : > { %3497 = vmatprep.subr.bf16.mxu0 %v4168_v3 }
 0x14f   : > { %3498 = vmatpush3.bf16.msra.mxu0 %v3765_v48 }
 0x150   : > { %3499 = vmatprep.subr.bf16.mxu0 %v4168_v3 }
 0x153   : > { %3500 = vmatpush3.bf16.msra.mxu0 %v3766_v49 }
 0x154   : > { %3529 = vmatprep.subr.bf16.mxu0 %v4168_v3 }
 0x156   : > { %3502 = vmatmul.mubr.bf16.vlgmr.msra.gmra.mrb[4].mxu0 %v988_v21 }
 0x157   : > { %3531 = vmatprep.mubr.msk.bf16.mxu0 %vm4169_vm0, %v4168_v3 }
 0x207   : > { %v1206_v23 = vpop.f32.mrb[0].mxu1 }
 0x208   : > { %v1207_v24 = vadd.f32 %v3256_v22, %v1206_v23  ;;  %v3483_v25 = vpop.f32.mrb[1].mxu1 }
 0x209   : > { %v1209_v26 = vpop.f32.mrb[2].mxu1  ;;  %v1094_v28 = vpop.f32.mrb[0].mxu0 }
 0x20a   : > { %v4745_v29 = vpack.c.bf16 %v1207_v24, %v1207_v24  ;;  %v3484_v30 = vpop.f32.mrb[3].mxu1  ;;  %v3463_v31 = vpop.f32.mrb[1].mxu0  ;;  %v1210_v33 = vadd.f32 %v3256_v22, %v1209_v26  ;;  %v1095_v34 = vadd.f32 %v3247_v27, %v1094_v28 }
 0x20b   : > { %v1097_v32 = vpop.f32.mrb[2].mxu0 }
 0x20c   : > { %v1366_v35 = vsel %vm1361_vm1, %v4745_v29, 0  ;;  %v3464_v36 = vpop.f32.mrb[3].mxu0  ;;  %v4750_v37 = vpack.c.bf16 %v1210_v33, %v1210_v33  ;;  %v4752_v38 = vpack.c.bf16 %v1095_v34, %v1095_v34  ;;  %v1098_v40 = vadd.f32 %v3247_v27, %v1097_v32 }
 0x20d   : > { %3506 = vmatpush3.bf16.xpose.msra.mxu1 %v1366_v35 }
 0x20e   : > { %3511 = vmatprep.subr.bf16.mxu1 %v4168_v3  ;;  %v1412_v39 = vsel %vm1361_vm1, %v4750_v37, 0  ;;  %v4761_v41 = vpack.c.bf16 %v1098_v40, %v1098_v40 }
 0x214   : > { %3508 = vmatmul.mubr.msk.bf16.vlgmr.msra.gmra.mrb[4].mxu1 %vm1361_vm1, %v4752_v38 }
 0x215   : > { %3512 = vmatpush3.bf16.xpose.msra.mxu1 %v1412_v39  ;;  %3513 = vmatprep.mubr.msk.bf16.mxu1 %vm4169_vm0, %v4168_v3 }
 0x216   : > { %3517 = vmatprep.subr.bf16.mxu1 %v4168_v3 }
 0x21c   : > { %3514 = vmatmul.mubr.msk.bf16.vlgmr.msra.gmra.mrb[8].mxu1 %vm1361_vm1, %v4761_v41 }
 0x21d   : > { %3519 = vmatprep.mubr.msk.bf16.mxu1 %vm4169_vm0, %v4168_v3 }
 0x229   : > { %v1318_v12 = vpop.f32.mrb[4].mxu0 }
 0x22a   : > { %v1319_v13 = vadd.f32 %v3265_v11, %v1318_v12  ;;  %v3503_v14 = vpop.f32.mrb[5].mxu0 }
 0x22b   : > { %v1321_v17 = vpop.f32.mrb[6].mxu0 }
 0x22c   : > { %v4811_v15 = vpack.c.bf16 %v1319_v13, %v1319_v13  ;;  %v1322_v20 = vadd.f32 %v3265_v11, %v1321_v17  ;;  %v3504_v21 = vpop.f32.mrb[7].mxu0 }
 0x22e   : > { %v1488_v16 = vsel %vm1486_vm3, %v4811_v15, 0  ;;  %v4821_v27 = vpack.c.bf16 %v1322_v20, %v1322_v20 }
 0x22f   : > { %3518 = vmatpush3.bf16.msra.mxu1 %v1488_v16 }
 0x230   : > { %3523 = vmatprep.subr.bf16.mxu1 %v4168_v3  ;;  %v1534_v32 = vsel %vm1486_vm3, %v4821_v27, 0 }
 0x2e7   : > { %v1402_v50 = vpop.f32.mrb[4].mxu1 }
 0x2e8   : > { %v1454_v52 = vmul.f32 0.17677669, %v1402_v50  ;;  %v3509_v53 = vpop.f32.mrb[5].mxu1 }
 0x2e9   : > { %v1405_v54 = vpop.f32.mrb[6].mxu1 }
 0x2ea   : > { %v3510_v55 = vpop.f32.mrb[7].mxu1  ;;  %v1456_v56 = vadd.f32 %v4788_v51, %v1454_v52 }
 0x2ec   : > { %v1459_v57 = vsel %vm1458_vm2, %v1456_v56, -inf }
 0x2ed   : > { %1460 = vmax.xlane.f32.xlu0 %v1459_v57 }
 0x2ef   : > { %v1448_v58 = vpop.f32.mrb[8].mxu1 }
 0x2f0   : > { %v1455_v60 = vmul.f32 0.17677669, %v1448_v58  ;;  %v3515_v61 = vpop.f32.mrb[9].mxu1 }
 0x2f1   : > { %v1451_v62 = vpop.f32.mrb[10].mxu1 }
 0x2f2   : > { %v3516_v63 = vpop.f32.mrb[11].mxu1  ;;  %v1457_v0 = vadd.f32 %v4795_v59, %v1455_v60 }
 0x2f4   : > { %v1462_v1 = vsel %vm1458_vm2, %v1457_v0, -inf }
 0x2f5   : > { %1463 = vmax.xlane.f32.xlu0 %v1462_v1 }
 0x30b   : > { %1581 = vrot.lane.b32.xlu0 %v4745_v29, %s4170_s16 }
 0x37a   : > { %v1461_v2 = vpop.xlane.xlu0 %1460 }
 0x37b   : > { %v1465_v4 = vsub.f32 %v1456_v56, %v1461_v2 }
 0x37d   : > { %v1467_v5 = vmul.f32 1.442695, %v1465_v4 }
 0x37f   : > { %3815 = vpow2.f32 %v1467_v5 }
 0x382   : > { %v1464_v6 = vpop.xlane.xlu0 %1463 }
 0x383   : > { %v1466_v22 = vsub.f32 %v1457_v0, %v1464_v6 }
 0x385   : > { %v1469_v23 = vmul.f32 1.442695, %v1466_v22 }
 0x386   : > { %v1582_v7 = vpop.permute.xlu0 %1581 }
 0x387   : > { %v1587_v8 = vsel %vm1361_vm1, %v1582_v7, 0  ;;  %3817 = vpow2.f32 %v1469_v23 }
 0x388   : > { %3530 = vmatpush3.bf16.xpose.msra.mxu0 %v1587_v8 }
 0x389   : > { %v3816_v9 = vpop.eup %3815  ;;  %3541 = vmatprep.subr.bf16.mxu0 %v4168_v3 }
 0x38a   : > { %v1471_v10 = vsel %vm1458_vm2, %v3816_v9, 0.0 }
 0x38b   : > { %1472 = vadd.xlane.f32.xlu1 %v1471_v10 }
 0x391   : > { %v3818_v24 = vpop.eup %3817 }
 0x392   : > { %v1474_v25 = vsel %vm1458_vm2, %v3818_v24, 0.0 }
 0x39c   : > { %1633 = vrot.lane.b32.xlu1 %v4750_v37, %s4170_s16 }
 0x3c0   : > { %1475 = vadd.xlane.f32.xlu1 %v1474_v25 }
 0x3d1   : > { %1578 = vrot.lane.b32.xlu1 %v4752_v38, %s4170_s16 }
 0x3d5   : > { %1630 = vrot.lane.b32.xlu1 %v4761_v41, %s4170_s16 }
 0x418   : > { %v1473_v26 = vpop.xlane.xlu1 %1472 }
 0x419   : > { %3819 = vrcp.f32 %v1473_v26 }
 0x41c   : > { %v1634_v33 = vpop.permute.xlu1 %1633 }
 0x41d   : > { %v1639_v42 = vsel %vm1361_vm1, %v1634_v33, 0  ;;  %v3767_v33 = vld [vmem:[%s4630_s11] sm:$0xff]  }
 0x423   : > { %v3820_v28 = vpop.eup %3819 }
 0x424   : > { %v1479_v30 = vmul.f32 %v3820_v28, %v3816_v9  ;;  %v3769_v28 = vld [vmem:[%s4630_s11 + $0x10] sm:$0xff]  }
 0x426   : > { %v1481_v31 = vpack.c.bf16 %v1479_v30, %v1479_v30 }
 0x428   : > { %3520 = vmatmul.mubr.msk.bf16.vlgmr.msra.gmra.mrb[12].mxu1 %vm1458_vm2, %v1481_v31 }
 0x429   : > { %3524 = vmatpush3.bf16.msra.mxu1 %v1534_v32  ;;  %3525 = vmatprep.mubr.msk.bf16.mxu1 %vm4169_vm0, %v4168_v3 }
 0x42a   : > { %3535 = vmatprep.subr.bf16.mxu1 %v4168_v3 }
 0x44d   : > { %v1476_v34 = vpop.xlane.xlu1 %1475 }
 0x44e   : > { %3821 = vrcp.f32 %v1476_v34 }
 0x451   : > { %v1579_v35 = vpop.permute.xlu1 %1578 }
 0x452   : > { %3532 = vmatmul.mubr.msk.bf16.vlgmr.msra.gmra.mrb[8].mxu0 %vm1361_vm1, %v1579_v35  ;;  %v3768_v35 = vld [vmem:[%s4630_s11 + $0x8] sm:$0xff]  }
 0x453   : > { %3543 = vmatprep.mubr.msk.bf16.mxu0 %vm4169_vm0, %v4168_v3 }
 0x455   : > { %v1631_v43 = vpop.permute.xlu1 %1630 }
 0x458   : > { %v3822_v36 = vpop.eup %3821 }
 0x459   : > { %v1480_v39 = vmul.f32 %v3822_v36, %v3818_v24 }
 0x45b   : > { %v1482_v40 = vpack.c.bf16 %v1480_v39, %v1480_v39 }
 0x45d   : > { %3526 = vmatmul.mubr.msk.bf16.vlgmr.msra.gmra.mrb[16].mxu1 %vm1458_vm2, %v1482_v40 }
 0x45e   : > { %3536 = vmatpush3.bf16.xpose.msra.mxu1 %v1639_v42  ;;  %3537 = vmatprep.mubr.msk.bf16.mxu1 %vm4169_vm0, %v4168_v3 }
 0x45f   : > { %3547 = vmatprep.subr.bf16.mxu1 %v4168_v3 }
 0x465   : > { %3538 = vmatmul.mubr.msk.bf16.vlgmr.msra.gmra.mrb[20].mxu1 %vm1361_vm1, %v1631_v43  ;;  %v3770_v43 = vld [vmem:[%s4630_s11 + $0x18] sm:$0xff]  }
 0x466   : > { %3549 = vmatprep.mubr.msk.bf16.mxu1 %vm4169_vm0, %v4168_v3 }
 0x4fb   : > { %v4840_v44 = vpop.f32.mrb[12].mxu1 }
 0x4fc   : > { %v3521_v45 = vpop.f32.mrb[13].mxu1 }
 0x4fd   : > { %v1527_v46 = vpop.f32.mrb[14].mxu1 }
 0x4fe   : > { %v3522_v47 = vpop.f32.mrb[15].mxu1 }
 0x525   : > { %v1623_v48 = vpop.f32.mrb[8].mxu0 }
 0x526   : > { %v1681_v49 = vmul.f32 0.17677669, %v1623_v48  ;;  %v3533_v50 = vpop.f32.mrb[9].mxu0 }
 0x527   : > { %v1626_v52 = vpop.f32.mrb[10].mxu0 }
 0x528   : > { %v3534_v53 = vpop.f32.mrb[11].mxu0  ;;  %v1683_v54 = vadd.f32 %v4788_v51, %v1681_v49 }
 0x52a   : > { %v1685_v55 = vsel %vm1458_vm2, %v1683_v54, -inf }
 0x52b   : > { %1686 = vmax.xlane.f32.xlu0 %v1685_v55 }
 0x530   : > { %v4844_v56 = vpop.f32.mrb[16].mxu1 }
 0x531   : > { %v1576_v57 = vpack.c.bf16 %v4844_v56, %v4840_v44  ;;  %v3527_v58 = vpop.f32.mrb[17].mxu1 }
 0x532   : > { %v1573_v60 = vpop.f32.mrb[18].mxu1 }
 0x533   : > { %v3528_v61 = vpop.f32.mrb[19].mxu1 }
 0x538   : > { %v1675_v62 = vpop.f32.mrb[20].mxu1 }
 0x539   : > { %v1682_v63 = vmul.f32 0.17677669, %v1675_v62  ;;  %v3539_v0 = vpop.f32.mrb[21].mxu1 }
 0x53a   : > { %v1678_v1 = vpop.f32.mrb[22].mxu1 }
 0x53b   : > { %v3540_v2 = vpop.f32.mrb[23].mxu1  ;;  %v1684_v4 = vadd.f32 %v4795_v59, %v1682_v63 }
 0x53d   : > { %v1688_v5 = vsel %vm1458_vm2, %v1684_v4, -inf }
 0x53e   : > { %1689 = vmax.xlane.f32.xlu1 %v1688_v5 }
 0x54f   : > { %1759 = vrot.lane.b32.xlu1 %v4821_v27, %s4170_s16 }
 0x553   : > { %1922 = vrot.lane.b32.xlu1 %v4745_v29, %s4171_s25 }
 0x557   : > { %1972 = vrot.lane.b32.xlu1 %v4750_v37, %s4171_s25 }
 0x55b   : > { %1970 = vrot.lane.b32.xlu1 %v4761_v41, %s4171_s25 }
 0x5b8   : > { %v1687_v6 = vpop.xlane.xlu0 %1686 }
 0x5b9   : > { %v1691_v7 = vsub.f32 %v1683_v54, %v1687_v6 }
 0x5bb   : > { %v1693_v8 = vmul.f32 1.442695, %v1691_v7 }
 0x5bd   : > { %3823 = vpow2.f32 %v1693_v8 }
 0x5c7   : > { %v3824_v9 = vpop.eup %3823 }
 0x5c8   : > { %v1697_v10 = vsel %vm1458_vm2, %v3824_v9, 0.0 }
 0x5c9   : > { %1698 = vadd.xlane.f32.xlu0 %v1697_v10 }
 0x5cb   : > { %v1690_v11 = vpop.xlane.xlu1 %1689 }
 0x5cc   : > { %v1692_v12 = vsub.f32 %v1684_v4, %v1690_v11 }
 0x5ce   : > { %v1695_v13 = vmul.f32 1.442695, %v1692_v12 }
 0x5cf   : > { %v1760_v14 = vpop.permute.xlu1 %1759 }
 0x5d0   : > { %3825 = vpow2.f32 %v1695_v13  ;;  %v1765_v16 = vsel %vm1486_vm3, %v1760_v14, 0 }
 0x5d1   : > { %3548 = vmatpush3.bf16.msra.mxu1 %v1765_v16 }
 0x5d2   : > { %3561 = vmatprep.subr.bf16.mxu1 %v4168_v3 }
 0x5d3   : > { %v1923_v36 = vpop.permute.xlu1 %1922 }
 0x5d4   : > { %v1928_v53 = vsel %vm1361_vm1, %v1923_v36, 0 }
 0x5d7   : > { %v1973_v39 = vpop.permute.xlu1 %1972 }
 0x5d8   : > { %v1978_v40 = vsel %vm1361_vm1, %v1973_v39, 0 }
 0x5da   : > { %v3826_v17 = vpop.eup %3825 }
 0x5db   : > { %v1700_v20 = vsel %vm1458_vm2, %v3826_v17, 0.0  ;;  %v1971_v42 = vpop.permute.xlu1 %1970 }
 0x5dc   : > { %1701 = vadd.xlane.f32.xlu0 %v1700_v20 }
 0x5f2   : > { %1710 = vrot.lane.b32.xlu0 %v4811_v15, %s4170_s16 }
 0x5f6   : > { %1920 = vrot.lane.b32.xlu0 %v4752_v38, %s4171_s25 }
 0x656   : > { %v1699_v21 = vpop.xlane.xlu0 %1698 }
 0x657   : > { %3827 = vrcp.f32 %v1699_v21 }
 0x661   : > { %v3828_v22 = vpop.eup %3827 }
 0x662   : > { %v1705_v24 = vmul.f32 %v3828_v22, %v3824_v9 }
 0x664   : > { %v1707_v30 = vpack.c.bf16 %v1705_v24, %v1705_v24 }
 0x669   : > { %v1702_v23 = vpop.xlane.xlu0 %1701 }
 0x66a   : > { %3829 = vrcp.f32 %v1702_v23 }
 0x66d   : > { %v1711_v25 = vpop.permute.xlu0 %1710 }
 0x66e   : > { %v1716_v26 = vsel %vm1486_vm3, %v1711_v25, 0 }
 0x66f   : > { %3542 = vmatpush3.bf16.msra.mxu0 %v1716_v26 }
 0x670   : > { %3553 = vmatprep.subr.bf16.mxu0 %v4168_v3 }
 0x672   : > { %3544 = vmatmul.mubr.msk.bf16.vlgmr.msra.gmra.mrb[12].mxu0 %vm1458_vm2, %v1707_v30 }
 0x673   : > { %3554 = vmatpush3.bf16.msra.mxu0 %v3769_v28  ;;  %3557 = vmatprep.mubr.msk.bf16.mxu0 %vm4169_vm0, %v4168_v3 }
 0x674   : > { %v3830_v31 = vpop.eup %3829  ;;  %3555 = vmatprep.subr.bf16.mxu0 %v4168_v3 }
 0x675   : > { %v1706_v32 = vmul.f32 %v3830_v31, %v3826_v17 }
 0x677   : > { %v1708_v34 = vpack.c.bf16 %v1706_v32, %v1706_v32  ;;  %3556 = vmatpush3.bf16.msra.mxu0 %v3770_v43 }
 0x678   : > { %3569 = vmatprep.subr.bf16.mxu0 %v4168_v3 }
 0x679   : > { %3550 = vmatmul.mubr.msk.bf16.vlgmr.msra.gmra.mrb[24].mxu1 %vm1458_vm2, %v1708_v34 }
 0x67a   : > { %3562 = vmatpush3.bf16.msra.mxu1 %v3767_v33  ;;  %3565 = vmatprep.mubr.msk.bf16.mxu1 %vm4169_vm0, %v4168_v3 }
 0x67b   : > { %3563 = vmatprep.subr.bf16.mxu1 %v4168_v3 }
 0x67e   : > { %3564 = vmatpush3.bf16.msra.mxu1 %v3768_v35 }
 0x67f   : > { %3575 = vmatprep.subr.bf16.mxu1 %v4168_v3 }
 0x681   : > { %3566 = vmatmul.mubr.msk.bf16.vlgmr.msra.gmra.mrb[28].mxu1 %vm1361_vm1, %v1576_v57  ;;  %v1921_v57 = vpop.permute.xlu0 %1920 }
 0x682   : > { %3577 = vmatprep.mubr.msk.bf16.mxu1 %vm4169_vm0, %v4168_v3 }
 0x687   : > { %3576 = vmatpush3.bf16.xpose.msra.mxu1 %v1978_v40 }
 0x688   : > { %3587 = vmatprep.subr.bf16.mxu1 %v4168_v3 }
 0x68e   : > { %3578 = vmatmul.mubr.msk.bf16.vlgmr.msra.gmra.mrb[32].mxu1 %vm1361_vm1, %v1971_v42 }
 0x68f   : > { %3589 = vmatprep.mubr.msk.bf16.mxu1 %vm4169_vm0, %v4168_v3 }
 0x745   : > { %v1752_v44 = vpop.f32.mrb[12].mxu0 }
 0x746   : > { %v3545_v45 = vpop.f32.mrb[13].mxu0 }
 0x747   : > { %v1755_v46 = vpop.f32.mrb[14].mxu0 }
 0x748   : > { %v3546_v47 = vpop.f32.mrb[15].mxu0 }
 0x749   : > { %v3771_v47 = vld [vmem:[%s4630_s11 + $0x20] sm:$0xff]  }
 0x74c   : > { %v1801_v48 = vpop.f32.mrb[24].mxu1 }
 0x74d   : > { %v1807_v49 = vpack.c.bf16 %v1801_v48, %v1752_v44  ;;  %v3551_v50 = vpop.f32.mrb[25].mxu1 }
 0x74e   : > { %v1804_v52 = vpop.f32.mrb[26].mxu1 }
 0x74f   : > { %v3552_v54 = vpop.f32.mrb[27].mxu1  ;;  %3558 = vmatmul.mubr.msk.bf16.vlgmr.msra.gmra.mrb[16].mxu0 %vm1361_vm1, %v1807_v49 }
 0x750   : > { %3570 = vmatpush3.bf16.xpose.msra.mxu0 %v1928_v53  ;;  %3571 = vmatprep.mubr.msk.bf16.mxu0 %vm4169_vm0, %v4168_v3  ;;  %v3772_v53 = vld [vmem:[%s4630_s11 + $0x28] sm:$0xff]  }
 0x751   : > { %3581 = vmatprep.subr.bf16.mxu0 %v4168_v3 }
 0x754   : > { %v1913_v55 = vpop.f32.mrb[28].mxu1 }
 0x755   : > { %v3567_v56 = vpop.f32.mrb[29].mxu1 }
 0x756   : > { %v1916_v58 = vpop.f32.mrb[30].mxu1 }
 0x757   : > { %v3568_v60 = vpop.f32.mrb[31].mxu1  ;;  %3572 = vmatmul.mubr.msk.bf16.vlgmr.msra.gmra.mrb[20].mxu0 %vm1361_vm1, %v1921_v57 }
 0x758   : > { %3583 = vmatprep.mubr.msk.bf16.mxu0 %vm4169_vm0, %v4168_v3 }
 0x761   : > { %v2014_v61 = vpop.f32.mrb[32].mxu1 }
 0x762   : > { %v2021_v62 = vmul.f32 0.17677669, %v2014_v61  ;;  %v3579_v63 = vpop.f32.mrb[33].mxu1 }
 0x763   : > { %v2017_v0 = vpop.f32.mrb[34].mxu1 }
 0x764   : > { %v3580_v1 = vpop.f32.mrb[35].mxu1  ;;  %v2023_v2 = vadd.f32 %v4795_v59, %v2021_v62 }
 0x766   : > { %v2027_v4 = vsel %vm1458_vm2, %v2023_v2, -inf }
 0x767   : > { %2028 = vmax.xlane.f32.xlu1 %v2027_v4 }
 0x778   : > { %2096 = vrot.lane.b32.xlu1 %v4821_v27, %s4171_s25 }
 0x77c   : > { %2205 = vrot.lane.b32.xlu1 %v4745_v29, %s4172_s5 }
 0x780   : > { %2255 = vrot.lane.b32.xlu1 %v4750_v37, %s4172_s5 }
 0x784   : > { %2253 = vrot.lane.b32.xlu1 %v4761_v41, %s4172_s5 }
 0x7f4   : > { %v2029_v5 = vpop.xlane.xlu1 %2028 }
 0x7f5   : > { %v2031_v8 = vsub.f32 %v2023_v2, %v2029_v5 }
 0x7f7   : > { %v2034_v9 = vmul.f32 1.442695, %v2031_v8 }
 0x7f8   : > { %v2097_v6 = vpop.permute.xlu1 %2096 }
 0x7f9   : > { %v2102_v7 = vsel %vm1486_vm3, %v2097_v6, 0  ;;  %3831 = vpow2.f32 %v2034_v9 }
 0x7fa   : > { %3588 = vmatpush3.bf16.msra.mxu1 %v2102_v7 }
 0x7fb   : > { %3601 = vmatprep.subr.bf16.mxu1 %v4168_v3 }
 0x7fc   : > { %v2206_v35 = vpop.permute.xlu1 %2205 }
 0x7fd   : > { %v2211_v39 = vsel %vm1361_vm1, %v2206_v35, 0 }
 0x800   : > { %v2256_v62 = vpop.permute.xlu1 %2255 }
 0x801   : > { %v2261_v4 = vsel %vm1361_vm1, %v2256_v62, 0 }
 0x803   : > { %v3832_v23 = vpop.eup %3831 }
 0x804   : > { %v2039_v24 = vsel %vm1458_vm2, %v3832_v23, 0.0 }
 0x822   : > { %v1857_v10 = vpop.f32.mrb[16].mxu0 }
 0x823   : > { %v4913_v11 = vadd.f32 %v1913_v55, %v1857_v10  ;;  %v3559_v12 = vpop.f32.mrb[17].mxu0 }
 0x824   : > { %v1860_v29 = vpop.f32.mrb[18].mxu0 }
 0x825   : > { %v4915_v13 = vadd.f32 %v1916_v58, %v1860_v29  ;;  %v3560_v37 = vpop.f32.mrb[19].mxu0 }
 0x82a   : > { %v1964_v14 = vpop.f32.mrb[20].mxu0 }
 0x82b   : > { %v2020_v41 = vmul.f32 0.17677669, %v1964_v14  ;;  %v3573_v16 = vpop.f32.mrb[21].mxu0 }
 0x82c   : > { %v1967_v17 = vpop.f32.mrb[22].mxu0 }
 0x82d   : > { %v3574_v20 = vpop.f32.mrb[23].mxu0  ;;  %v2022_v21 = vadd.f32 %v4788_v51, %v2020_v41 }
 0x82f   : > { %v2024_v22 = vsel %vm1458_vm2, %v2022_v21, -inf }
 0x830   : > { %2025 = vmax.xlane.f32.xlu0 %v2024_v22 }
 0x834   : > { %2040 = vadd.xlane.f32.xlu0 %v2039_v24 }
 0x8bd   : > { %v2026_v25 = vpop.xlane.xlu0 %2025 }
 0x8be   : > { %v2030_v26 = vsub.f32 %v2022_v21, %v2026_v25 }
 0x8c0   : > { %v2032_v28 = vmul.f32 1.442695, %v2030_v26 }
 0x8c1   : > { %v2041_v30 = vpop.xlane.xlu0 %2040 }
 0x8c2   : > { %3833 = vpow2.f32 %v2032_v28 }
 0x8c3   : > { %3835 = vrcp.f32 %v2041_v30 }
 0x8cc   : > { %v3834_v31 = vpop.eup %3833 }
 0x8cd   : > { %v3836_v32 = vpop.eup %3835  ;;  %v2036_v33 = vsel %vm1458_vm2, %v3834_v31, 0.0 }
 0x8ce   : > { %v2045_v34 = vmul.f32 %v3836_v32, %v3832_v23  ;;  %2037 = vadd.xlane.f32.xlu0 %v2036_v33 }
 0x8d0   : > { %v2047_v36 = vpack.c.bf16 %v2045_v34, %v2045_v34 }
 0x8d2   : > { %3590 = vmatmul.mubr.msk.bf16.vlgmr.msra.gmra.mrb[36].mxu1 %vm1458_vm2, %v2047_v36 }
 0x8d3   : > { %3602 = vmatpush3.bf16.xpose.msra.mxu1 %v2211_v39  ;;  %3603 = vmatprep.mubr.msk.bf16.mxu1 %vm4169_vm0, %v4168_v3 }
 0x8d4   : > { %3613 = vmatprep.subr.bf16.mxu1 %v4168_v3 }
 0x8e4   : > { %2048 = vrot.lane.b32.xlu0 %v4811_v15, %s4171_s25 }
 0x8e8   : > { %2203 = vrot.lane.b32.xlu0 %v4752_v38, %s4172_s5 }
 0x95b   : > { %v2038_v40 = vpop.xlane.xlu0 %2037 }
 0x95c   : > { %3837 = vrcp.f32 %v2038_v40 }
 0x95f   : > { %v2049_v42 = vpop.permute.xlu0 %2048 }
 0x960   : > { %v2054_v43 = vsel %vm1486_vm3, %v2049_v42, 0 }
 0x961   : > { %3582 = vmatpush3.bf16.msra.mxu0 %v2054_v43  ;;  %v3773_v43 = vld [vmem:[%s4630_s11 + $0x30] sm:$0xff]  }
 0x962   : > { %3593 = vmatprep.subr.bf16.mxu0 %v4168_v3 }
 0x963   : > { %v2204_v44 = vpop.permute.xlu0 %2203 }
 0x964   : > { %3604 = vmatmul.mubr.msk.bf16.vlgmr.msra.gmra.mrb[40].mxu1 %vm1361_vm1, %v2204_v44  ;;  %v3774_v44 = vld [vmem:[%s4630_s11 + $0x38] sm:$0xff]   ;;  %s5207_s11 = scalar_lea.vmem %s5206_s26, %s4640_s13 }
 0x965   : > { %3615 = vmatprep.mubr.msk.bf16.mxu1 %vm4169_vm0, %v4168_v3 }
 0x966   : > { %v3838_v45 = vpop.eup %3837 }
 0x967   : > { %v2044_v46 = vmul.f32 %v3838_v45, %v3834_v31 }
 0x969   : > { %v2046_v48 = vpack.c.bf16 %v2044_v46, %v2044_v46 }
 0x96b   : > { %3584 = vmatmul.mubr.msk.bf16.vlgmr.msra.gmra.mrb[24].mxu0 %vm1458_vm2, %v2046_v48 }
 0x96c   : > { %3594 = vmatpush3.bf16.msra.mxu0 %v3771_v47  ;;  %3597 = vmatprep.mubr.msk.bf16.mxu0 %vm4169_vm0, %v4168_v3 }
 0x96d   : > { %3595 = vmatprep.subr.bf16.mxu0 %v4168_v3 }
 0x970   : > { %3596 = vmatpush3.bf16.msra.mxu0 %v3772_v53 }
 0x971   : > { %3607 = vmatprep.subr.bf16.mxu0 %v4168_v3 }
 0x9a5   : > { %v2138_v38 = vpop.f32.mrb[36].mxu1 }
 0x9a6   : > { %v3591_v49 = vpop.f32.mrb[37].mxu1 }
 0x9a7   : > { %v2141_v50 = vpop.f32.mrb[38].mxu1 }
 0x9a8   : > { %v3592_v52 = vpop.f32.mrb[39].mxu1 }
 0xa37   : > { %v2247_v54 = vpop.f32.mrb[40].mxu1 }
 0xa38   : > { %v2303_v55 = vmul.f32 0.17677669, %v2247_v54  ;;  %v3605_v56 = vpop.f32.mrb[41].mxu1 }
 0xa39   : > { %v2250_v57 = vpop.f32.mrb[42].mxu1 }
 0xa3a   : > { %v3606_v58 = vpop.f32.mrb[43].mxu1  ;;  %v2305_v60 = vadd.f32 %v4788_v51, %v2303_v55  ;;  %v2254_v51 = vpop.permute.xlu1 %2253 }
 0xa3c   : > { %v2307_v61 = vsel %vm1458_vm2, %v2305_v60, -inf }
 0xa3d   : > { %2308 = vmax.xlane.f32.xlu0 %v2307_v61 }
 0xa3e   : > { %v2090_v63 = vpop.f32.mrb[24].mxu0 }
 0xa3f   : > { %v2144_v0 = vpack.c.bf16 %v2138_v38, %v2090_v63  ;;  %v3585_v1 = vpop.f32.mrb[25].mxu0 }
 0xa40   : > { %v2093_v2 = vpop.f32.mrb[26].mxu0  ;;  %v3775_v1 = vld [vmem:[%s4632_s2] ss:$8 sps:$4 sm:$0xff]  }
 0xa41   : > { %v3586_v5 = vpop.f32.mrb[27].mxu0  ;;  %3598 = vmatmul.mubr.msk.bf16.vlgmr.msra.gmra.mrb[28].mxu0 %vm1361_vm1, %v2144_v0  ;;  %v3777_v2 = vld [vmem:[%s4632_s2 + $0x4] ss:$8 sps:$4 sm:$0xff]  }
 0xa42   : > { %3608 = vmatpush3.bf16.xpose.msra.mxu0 %v2261_v4  ;;  %3609 = vmatprep.mubr.msk.bf16.mxu0 %vm4169_vm0, %v4168_v3  ;;  %v3780_v4 = vld [vmem:[%s4632_s2 + $0x14] ss:$8 sps:$4 sm:$0xff]   ;;  %v3778_v5 = vld [vmem:[%s4632_s2 + $0x10] ss:$8 sps:$4 sm:$0xff]  }
 0xa43   : > { %3619 = vmatprep.subr.bf16.mxu0 %v4168_v3 }
 0xa49   : > { %3610 = vmatmul.mubr.msk.bf16.vlgmr.msra.gmra.mrb[32].mxu0 %vm1361_vm1, %v2254_v51 }
 0xa4a   : > { %3621 = vmatprep.mubr.msk.bf16.mxu0 %vm4169_vm0, %v4168_v3 }
 0xaca   : > { %v2309_v6 = vpop.xlane.xlu0 %2308 }
 0xacb   : > { %v2313_v7 = vsub.f32 %v2305_v60, %v2309_v6 }
 0xacd   : > { %v2315_v8 = vmul.f32 1.442695, %v2313_v7 }
 0xacf   : > { %3839 = vpow2.f32 %v2315_v8 }
 0xad9   : > { %v3840_v9 = vpop.eup %3839 }
 0xada   : > { %v2319_v10 = vsel %vm1458_vm2, %v3840_v9, 0.0 }
 0xadb   : > { %2320 = vadd.xlane.f32.xlu0 %v2319_v10 }
 0xb14   : > { %v2194_v12 = vpop.f32.mrb[28].mxu0 }
 0xb15   : > { %v2201_v29 = vadd.f32 %v2194_v12, %v4913_v11  ;;  %v3599_v37 = vpop.f32.mrb[29].mxu0  ;;  %v3783_v12 = vld [vmem:[%s4632_s2 + $0x24] ss:$8 sps:$4 sm:$0xff]  }
 0xb16   : > { %v2197_v14 = vpop.f32.mrb[30].mxu0  ;;  %v3786_v37 = vld [vmem:[%s4632_s2 + $0x34] ss:$8 sps:$4 sm:$0xff]  }
 0xb17   : > { %v2202_v41 = vadd.f32 %v2197_v14, %v4915_v13  ;;  %v3600_v16 = vpop.f32.mrb[31].mxu0  ;;  %v3784_v14 = vld [vmem:[%s4632_s2 + $0x30] ss:$8 sps:$4 sm:$0xff]  }
 0xb18   : > { %v3787_v16 = vld [vmem:[%s4632_s2 + $0x40] ss:$8 sps:$4 sm:$0xff]  }
 0xb1c   : > { %v2297_v17 = vpop.f32.mrb[32].mxu0 }
 0xb1d   : > { %v2304_v20 = vmul.f32 0.17677669, %v2297_v17  ;;  %v3611_v21 = vpop.f32.mrb[33].mxu0  ;;  %v3792_v17 = vld [vmem:[%s4632_s2 + $0x54] ss:$8 sps:$4 sm:$0xff]  }
 0xb1e   : > { %v2300_v22 = vpop.f32.mrb[34].mxu0  ;;  %v3793_v21 = vld [vmem:[%s4632_s2 + $0x60] ss:$8 sps:$4 sm:$0xff]  }
 0xb1f   : > { %v3612_v23 = vpop.f32.mrb[35].mxu0  ;;  %v2306_v24 = vadd.f32 %v4795_v59, %v2304_v20  ;;  %v3790_v20 = vld [vmem:[%s4632_s2 + $0x50] ss:$8 sps:$4 sm:$0xff]   ;;  %v3795_v22 = vld [vmem:[%s4632_s2 + $0x64] ss:$8 sps:$4 sm:$0xff]  }
 0xb20   : > { %v3798_v23 = vld [vmem:[%s4632_s2 + $0x74] ss:$8 sps:$4 sm:$0xff]  }
 0xb21   : > { %v2310_v25 = vsel %vm1458_vm2, %v2306_v24, -inf }
 0xb22   : > { %2311 = vmax.xlane.f32.xlu1 %v2310_v25  ;;  %v3796_v25 = vld [vmem:[%s4632_s2 + $0x70] ss:$8 sps:$4 sm:$0xff]  }
 0xb33   : > { %2379 = vrot.lane.b32.xlu1 %v4821_v27, %s4172_s5 }
 0xb68   : > { %v2321_v59 = vpop.xlane.xlu0 %2320 }
 0xbaf   : > { %v2312_v26 = vpop.xlane.xlu1 %2311 }
 0xbb0   : > { %v2314_v11 = vsub.f32 %v2306_v24, %v2312_v26  ;;  %v4173_v24 = vmov 0   ;;  %v3799_v26 = vld [vmem:[%s4684_s7 + $0x40] sm:$0xff]  }
 0xbb2   : > { %v2317_v28 = vmul.f32 1.442695, %v2314_v11  ;;  %v3800_v11 = vld [vmem:[%s4684_s7] sm:$0xff]  }
 0xbb3   : > { %v2380_v30 = vpop.permute.xlu1 %2379 }
 0xbb4   : > { %3841 = vpow2.f32 %v2317_v28  ;;  %v2385_v13 = vsel %vm1486_vm3, %v2380_v30, 0  ;;  %v3801_v28 = vld [vmem:[%s4684_s7 + $0x48] sm:$0xff]  }
 0xbb5   : > { %3620 = vmatpush3.bf16.msra.mxu0 %v2385_v13  ;;  %3843 = vrcp.f32 %v2321_v59  ;;  %v3802_v30 = vld [vmem:[%s4684_s7 + $0x8] sm:$0xff]   ;;  %v3803_v13 = vld [vmem:[%s4684_s7 + $0x50] sm:$0xff]   ;;  %v3806_v59 = vld [vmem:[%s4684_s7 + $0x18] sm:$0xff]  }
 0xbb6   : > { %2647 = vmatprep.subr.bf16.mxu0 %v3777_v2 }
 0xbbe   : > { %v3842_v31 = vpop.eup %3841 }
 0xbbf   : > { %v2322_v32 = vsel %vm1458_vm2, %v3842_v31, 0.0  ;;  %v3844_v33 = vpop.eup %3843 }
 0xbc0   : > { %2323 = vadd.xlane.f32.xlu0 %v2322_v32  ;;  %v2327_v34 = vmul.f32 %v3844_v33, %v3840_v9  ;;  %v3805_v32 = vld [vmem:[%s4684_s7 + $0x58] sm:$0xff]   ;;  %v3807_v33 = vld [vmem:[%s4684_s7 + $0x60] sm:$0xff]  }
 0xbc2   : > { %v2329_v39 = vpack.c.bf16 %v2327_v34, %v2327_v34  ;;  %v3809_v34 = vld [vmem:[%s4684_s7 + $0x68] sm:$0xff]  }
 0xbd6   : > { %2331 = vrot.lane.b32.xlu0 %v4811_v15, %s4172_s5 }
 0xc4d   : > { %v2324_v27 = vpop.xlane.xlu0 %2323 }
 0xc4e   : > { %3845 = vrcp.f32 %v2324_v27  ;;  %v3808_v27 = vld [vmem:[%s4684_s7 + $0x20] sm:$0xff]  }
 0xc51   : > { %v2332_v35 = vpop.permute.xlu0 %2331 }
 0xc52   : > { %v2337_v36 = vsel %vm1486_vm3, %v2332_v35, 0 }
 0xc53   : > { %3614 = vmatpush3.bf16.msra.mxu1 %v2337_v36 }
 0xc54   : > { %3625 = vmatprep.subr.bf16.mxu1 %v4168_v3 }
 0xc56   : > { %3616 = vmatmul.mubr.msk.bf16.vlgmr.msra.gmra.mrb[44].mxu1 %vm1458_vm2, %v2329_v39 }
 0xc57   : > { %3629 = vmatprep.mubr.msk.bf16.mxu1 %vm4169_vm0, %v4168_v3  ;;  %3626 = vmatpush3.bf16.msra.mxu1 %v3773_v43 }
 0xc58   : > { %v3846_v15 = vpop.eup %3845  ;;  %3627 = vmatprep.subr.bf16.mxu1 %v4168_v3  ;;  %v3304_v3 = vld [vmem:[%s5207_s11] ss:$0 sm:$0xff] }
 0xc59   : > { %v2328_v40 = vmul.f32 %v3846_v15, %v3842_v31  ;;  %v3804_v31 = vld [vmem:[%s4684_s7 + $0x10] sm:$0xff]  }
 0xc5b   : > { %v2330_v42 = vpack.c.bf16 %v2328_v40, %v2328_v40  ;;  %3628 = vmatpush3.bf16.msra.mxu1 %v3774_v44  ;;  %v3305_v44 = vld [vmem:[%s5209_s28] ss:$0 sm:$0xff] }
 0xc5c   : > { %3423 = vmatprep.subr.bf16.mxu1 %v3799_v26 }
 0xc5d   : > { %3622 = vmatmul.mubr.msk.bf16.vlgmr.msra.gmra.mrb[36].mxu0 %vm1458_vm2, %v2330_v42 }
 0xc5e   : > { %2648 = vmatpush1.bf16.msra.mxu0 %v3775_v1  ;;  %2679 = vmatprep.mubr.bf16.mxu0 %v4173_v24 }
 0xc5f   : > { %2649 = vmatprep.subr.bf16.mxu0 %v3780_v4 }
 0xc62   : > { %2650 = vmatpush1.bf16.msra.mxu0 %v3778_v5 }
 0xc63   : > { %2651 = vmatprep.subr.bf16.mxu0 %v3783_v12 }
 0xd29   : > { %v2373_v45 = vpop.f32.mrb[44].mxu1 }
 0xd2a   : > { %v3617_v46 = vpop.f32.mrb[45].mxu1 }
 0xd2b   : > { %v2376_v47 = vpop.f32.mrb[46].mxu1 }
 0xd2c   : > { %v3618_v48 = vpop.f32.mrb[47].mxu1 }
 0xd30   : > { %v2421_v38 = vpop.f32.mrb[36].mxu0 }
 0xd31   : > { %v2427_v49 = vpack.c.bf16 %v2421_v38, %v2373_v45  ;;  %v3623_v50 = vpop.f32.mrb[37].mxu0  ;;  %v3306_v38 = vld [vmem:[%s962_s6] ss:$0 sm:$0xff] }
 0xd32   : > { %v2424_v52 = vpop.f32.mrb[38].mxu0 }
 0xd33   : > { %v3624_v53 = vpop.f32.mrb[39].mxu0  ;;  %3630 = vmatmul.mubr.msk.bf16.vlgmr.msra.gmra.mrb[48].mxu1 %vm1361_vm1, %v2427_v49 }
 0xd34   : > { %3424 = vmatpush3.bf16.msra.mxu1 %v3800_v11 }
 0xd35   : > { %3425 = vmatprep.subr.bf16.mxu1 %v3801_v28 }
 0xd38   : > { %3426 = vmatpush3.bf16.msra.mxu1 %v3802_v30 }
 0xd39   : > { %3427 = vmatprep.subr.bf16.mxu1 %v3803_v13 }
 0xd3c   : > { %3428 = vmatpush3.bf16.msra.mxu1 %v3804_v31 }
 0xd3d   : > { %3429 = vmatprep.subr.bf16.mxu1 %v3805_v32 }
 0xd40   : > { %3430 = vmatpush3.bf16.msra.mxu1 %v3806_v59 }
 0xd41   : > { %3431 = vmatprep.subr.bf16.mxu1 %v3807_v33 }
 0xd44   : > { %3432 = vmatpush3.bf16.msra.mxu1 %v3808_v27 }
 0xd45   : > { %3433 = vmatprep.subr.bf16.mxu1 %v3809_v34 }
 0xe06   : > { %v2477_v54 = vpop.f32.mrb[48].mxu1 }
 0xe07   : > { %v2484_v55 = vadd.f32 %v2477_v54, %v2201_v29  ;;  %v3631_v56 = vpop.f32.mrb[49].mxu1  ;;  %v3781_v29 = vld [vmem:[%s4632_s2 + $0x20] ss:$8 sps:$4 sm:$0xff]  }
 0xe08   : > { %v2480_v57 = vpop.f32.mrb[50].mxu1  ;;  %2652 = vmatpush1.bf16.msra.mxu0 %v3781_v29  ;;  %v3810_v54 = vld [vmem:[%s4684_s7 + $0x28] sm:$0xff]   ;;  %v3813_v56 = vld [vmem:[%s4684_s7 + $0x78] sm:$0xff]  }
 0xe09   : > { %v2493_v58 = vadd.f32 %v3304_v3, %v2484_v55  ;;  %v2485_v60 = vadd.f32 %v2480_v57, %v2202_v41  ;;  %v3632_v61 = vpop.f32.mrb[51].mxu1  ;;  %2653 = vmatprep.subr.bf16.mxu0 %v3786_v37  ;;  %v3789_v41 = vld [vmem:[%s4632_s2 + $0x44] ss:$8 sps:$4 sm:$0xff]   ;;  %3434 = vmatpush3.bf16.msra.mxu1 %v3810_v54  ;;  %v3812_v55 = vld [vmem:[%s4684_s7 + $0x30] sm:$0xff]   ;;  %v3814_v57 = vld [vmem:[%s4684_s7 + $0x38] sm:$0xff]  }
 0xe0b   : > { %v2494_v62 = vadd.f32 %v3304_v3, %v2485_v60  ;;  %v2495_v63 = vadd.f32 %v2493_v58, %v4719_v18  ;;  %v3811_v3 = vld [vmem:[%s4684_s7 + $0x70] sm:$0xff]   ;;  %v2557_v58 = vlaneseq }
 0xe0c   : > { %2654 = vmatpush1.bf16.msra.mxu0 %v3784_v14  ;;  %3435 = vmatprep.subr.bf16.mxu1 %v3811_v3 }
 0xe0d   : > { %2499 = vadd.xlane.f32.xlu1 %v2495_v63  ;;  %v2496_v0 = vadd.f32 %v2494_v62, %v4721_v19  ;;  %2655 = vmatprep.subr.bf16.mxu0 %v3789_v41  ;;  %v2558_v60 = vshrl.u32 %v2557_v58, 7  ;;  %v2555_v62 = vld [vmem:[%s4674_s23] sm:$0x3] }
 0xe0e   : > { %3436 = vmatpush3.bf16.msra.mxu1 %v3812_v55  ;;  %v3323_v41 = vld [vmem:[%s969_s17] ss:$0 sm:$0xff]  ;;  %s5212_s17 = sld [smem:[#allocation26_spill]] }
 0xe0f   : > { %2501 = vadd.xlane.f32.xlu0 %v2496_v0  ;;  %3437 = vmatprep.subr.bf16.mxu1 %v3813_v56  ;;  %v2559_v61 = vsub.s32 0, %v2558_v60 }
 0xe10   : > { %2656 = vmatpush1.bf16.msra.mxu0 %v3787_v16 }
 0xe11   : > { %2657 = vmatprep.subr.bf16.mxu0 %v3792_v17 }
 0xe12   : > { %3438 = vmatpush3.bf16.msra.mxu1 %v3814_v57 }
 0xe14   : > { %2658 = vmatpush1.bf16.msra.mxu0 %v3790_v20  ;;  %p3679_p4 = scmp.eq.s32.totalorder %s5212_s17, 1 }
 0xe15   : > { %2659 = vmatprep.subr.bf16.mxu0 %v3795_v22 }
 0xe18   : > { %2660 = vmatpush1.bf16.msra.mxu0 %v3793_v21 }
 0xe19   : > { %2661 = vmatprep.subr.bf16.mxu0 %v3798_v23 }
 0xe1c   : > { %2662 = vmatpush1.bf16.msra.mxu0 %v3796_v25 }
 0xe9a   : > { %v2500_v51 = vpop.xlane.xlu1 %2499 }
 0xe9b   : > { %v2504_v6 = vmul.f32 0.0078125, %v2500_v51 }
 0xe9c   : > { %v2502_v7 = vpop.xlane.xlu0 %2501 }
 0xe9d   : > { %v4984_v18 = vsub.f32 %v2495_v63, %v2504_v6  ;;  %v2505_v19 = vmul.f32 0.0078125, %v2502_v7  ;;  %v2563_v63 = vsub.s32 1, %v2558_v60 }
 0xe9f   : > { %v4986_v8 = vsub.f32 %v2496_v0, %v2505_v19  ;;  %v2508_v9 = vmul.f32 %v4984_v18, %v4984_v18  ;;  %v2560_v0 = vrot.slane %v2555_v62, %v2559_v61  ;;  %v2564_v1 = vrot.slane %v2555_v62, %v2563_v63 }
 0xea1   : > { %2510 = vadd.xlane.f32.xlu0 %v2508_v9  ;;  %v2509_v10 = vmul.f32 %v4986_v8, %v4986_v8 }
 0xea3   : > { %2512 = vadd.xlane.f32.xlu1 %v2509_v10 }
 0xf2e   : > { %v2511_v35 = vpop.xlane.xlu0 %2510 }
 0xf2f   : > { %v2514_v36 = vmul.f32 0.0078125, %v2511_v35 }
 0xf30   : > { %v2513_v39 = vpop.xlane.xlu1 %2512 }
 0xf31   : > { %v2516_v15 = vadd.f32 1e-12, %v2514_v36  ;;  %v2515_v40 = vmul.f32 0.0078125, %v2513_v39 }
 0xf33   : > { %3847 = vrsqrt.f32 %v2516_v15  ;;  %v2517_v42 = vadd.f32 1e-12, %v2515_v40 }
 0xf35   : > { %3849 = vrsqrt.f32 %v2517_v42  ;;  %v3340_v42 = vld [vmem:[%s972_s29] ss:$0 sm:$0xff]  ;;  %s4063_s29 = scalar_lea.vmem %s2926_s21, 256 }
 0xf36   : > { %p4064_p6 = scmp.ne.s32.totalorder %s2926_s21, %s4063_s29  ;;  %p4071_p5 = scmp.lt.s32.totalorder %s4063_s29, %s4063_s29 }
 0xf38   : > { %p4065_p9 = pnand %p4064_p6, %p3679_p4  ;;  %p4072_p12 = por %p4071_p5, %p4070_p2 }
 0xf3a   : > { %p4066_p10 = pneg %p4065_p9 }
 0xf3c   : > { %p4073_p1 = pnand %p4072_p12, %p4066_p10 }
 0xf3d   : > { %v3848_v43 = vpop.eup %3847 }
 0xf3e   : > { %v2520_v45 = vmul.f32 %v3848_v43, %v4984_v18 }
 0xf3f   : > { %v3850_v46 = vpop.eup %3849 }
 0xf40   : > { %v2521_v47 = vmul.f32 %v3850_v46, %v4986_v8  ;;  %v2528_v48 = vmul.f32 %v3305_v44, %v2520_v45  ;;  %v3341_v45 = vld [vmem:[%s975_s9] ss:$0 sm:$0xff] }
 0xf42   : > { %v2529_v49 = vmul.f32 %v3305_v44, %v2521_v47  ;;  %v2536_v50 = vadd.f32 %v3306_v38, %v2528_v48 }
 0xf44   : > { %v2537_v52 = vadd.f32 %v3306_v38, %v2529_v49 }
 0xf46   : > { %v2538_v53 = vpack.c.bf16 %v2537_v52, %v2536_v50 }
 0xf48   : > { %2680 = vmatmul.mubr.bf16.vlgmr.msra.gmra.mrb[40].mxu0 %v2538_v53 }
0x101b   : > { %v2681_v2 = vpop.f32.mrb[40].mxu0 }
0x101c   : > { %v2682_v4 = vadd.f32 %v2681_v2, %v2560_v0  ;;  %v2683_v5 = vpop.f32.mrb[41].mxu0 }
0x101d   : > { %v2684_v51 = vadd.f32 %v2683_v5, %v2564_v1  ;;  %v2685_v6 = vpop.f32.mrb[42].mxu0 }
0x101e   : > { %v2686_v7 = vadd.f32 %v2685_v6, %v2560_v0  ;;  %v2687_v18 = vpop.f32.mrb[43].mxu0  ;;  %v2690_v8 = vmax.f32 %v2682_v4, 0.0 }
0x101f   : > { %v2688_v19 = vadd.f32 %v2687_v18, %v2564_v1  ;;  %v2691_v10 = vmax.f32 %v2684_v51, 0.0 }
0x1020   : > { %v2692_v9 = vmax.f32 %v2686_v7, 0.0 }
0x1021   : > { %v2693_v12 = vmax.f32 %v2688_v19, 0.0 }
0x1022   : > { %v2694_v29 = vpack.c.bf16 %v2692_v9, %v2690_v8 }
0x1023   : > { %v2695_v37 = vpack.c.bf16 %v2693_v12, %v2691_v10 }
0x1025   : > { %2863 = vmatprep.mubr.bf16.mxu1 %v2695_v37 }
0x1026   : > { %2864 = vmatmul.mubr.bf16.vlgmr.msra.gmra.mrb[52].mxu1 %v2694_v29 }
0x10f9   : > { %v3439_v14 = vpop.f32.mrb[52].mxu1 }
0x10fa   : > { %v3440_v16 = vpop.f32.mrb[53].mxu1 }
0x10fb   : > { %v3441_v17 = vadd.f32 %v3440_v16, %v3439_v14  ;;  %v3442_v20 = vpop.f32.mrb[54].mxu1 }
0x10fc   : > { %v3443_v21 = vpop.f32.mrb[55].mxu1 }
0x10fd   : > { %v2866_v22 = vadd.f32 %v3441_v17, %v3323_v41  ;;  %v3444_v23 = vadd.f32 %v3443_v21, %v3442_v20 }
0x10ff   : > { %v2869_v24 = vadd.f32 %v3444_v23, %v3323_v41  ;;  %v2872_v25 = vadd.f32 %v2866_v22, %v2536_v50 }
0x1101   : > { %2876 = vadd.xlane.f32.xlu0 %v2872_v25  ;;  %v2873_v26 = vadd.f32 %v2869_v24, %v2537_v52 }
0x1103   : > { %2878 = vadd.xlane.f32.xlu1 %v2873_v26 }
0x118e   : > { %v2877_v11 = vpop.xlane.xlu0 %2876 }
0x118f   : > { %v2880_v28 = vmul.f32 0.0078125, %v2877_v11 }
0x1190   : > { %v2879_v30 = vpop.xlane.xlu1 %2878 }
0x1191   : > { %v2882_v13 = vsub.f32 %v2872_v25, %v2880_v28  ;;  %v2881_v31 = vmul.f32 0.0078125, %v2879_v30 }
0x1193   : > { %v2883_v32 = vsub.f32 %v2873_v26, %v2881_v31  ;;  %v2884_v59 = vmul.f32 %v2882_v13, %v2882_v13 }
0x1195   : > { %2886 = vadd.xlane.f32.xlu0 %v2884_v59  ;;  %v2885_v33 = vmul.f32 %v2883_v32, %v2883_v32 }
0x1197   : > { %2888 = vadd.xlane.f32.xlu1 %v2885_v33 }
0x1222   : > { %v2887_v27 = vpop.xlane.xlu0 %2886 }
0x1223   : > { %v2890_v34 = vmul.f32 0.0078125, %v2887_v27 }
0x1224   : > { %v2889_v35 = vpop.xlane.xlu1 %2888 }
0x1225   : > { %v2892_v36 = vadd.f32 1e-12, %v2890_v34  ;;  %v2891_v39 = vmul.f32 0.0078125, %v2889_v35 }
0x1227   : > { %3851 = vrsqrt.f32 %v2892_v36  ;;  %v2893_v15 = vadd.f32 1e-12, %v2891_v39 }
0x1229   : > { %3853 = vrsqrt.f32 %v2893_v15 }
0x1231   : > { %v3852_v40 = vpop.eup %3851 }
0x1232   : > { %v2896_v43 = vmul.f32 %v3852_v40, %v2882_v13 }
0x1233   : > { %v3854_v44 = vpop.eup %3853 }
0x1234   : > { %v2897_v46 = vmul.f32 %v3854_v44, %v2883_v32  ;;  %v2904_v47 = vmul.f32 %v3340_v42, %v2896_v43 }
0x1236   : > { %v2905_v48 = vmul.f32 %v3340_v42, %v2897_v46  ;;  %v2912_v38 = vadd.f32 %v3341_v45, %v2904_v47 }
0x1238   : > { %v2913_v49 = vadd.f32 %v3341_v45, %v2905_v48  ;;  %2914 = vst [vmem:[#allocation14] sm:$0xff] %v2912_v38 }
0x123a   : > { %2915 = vst [vmem:[#allocation14 + $0x8] sm:$0xff] %v2913_v49 }
0x123b   : > { %4076 = shalt.err (!%p4073_p1)
}
0x123c   : > { %s5215_s18 = sld [smem:[#allocation44_spill]] }
0x1242   : > { %s4077_s25 = scalar_lea.hbm %s5215_s18, 256 }
0x1243   : > { %p4078_p8 = scmp.ne.s32.totalorder %s5215_s18, %s4077_s25  ;;  %p4083_p3 = scmp.lt.u32.totalorder %s4077_s25, %s5215_s18 }
0x1245   : > { %p4079_p11 = pnand %p4078_p8, %p3679_p4 }
0x1247   : > { %p4080_p0 = pneg %p4079_p11 }
0x1249   : > { %p4085_p13 = pnand %p4083_p3, %p4080_p0 }
0x124b   : > { %4088 = shalt.err (!%p4085_p13)
}
0x124c   : > { %s4175_s11 = smov 128   ;;  %s4176_s2 = smov 8  }
0x124d   : > { %3650 = dma.vmem_to_hbm [thread:$0]  (%p3679_p4), %s2926_s21, 256, %s5215_s18, [#allocation4], %s4175_s11, %s4175_s11, %s4176_s2  }
0x124e   : > { %4130 = dma.done.wait (%p3679_p4), [#allocation4], 256  }
0x124f   : > { %4132 = vsyncadd (%p3679_p4), [#allocation4], 4294967040 }
0x1250 PF: > { %s5216_s28 = sld [smem:[#allocation23_spill]]  ;;  %s5217_s27 = sld [smem:[#allocation20_spill]] }
0x1251   : > { %s5219_s29 = sld [smem:[#allocation25_spill]]  ;;  %s5220_s30 = sld [smem:[#allocation22_spill]] }
0x1252   : > { %s5221_s0 = sld [smem:[#allocation24_spill]] }
0x1256   : > { %s39_s19 = sadd.s32 1, %s5216_s28   ;;  %s5218_s28 = sld [smem:[#allocation21_spill]] }
0x1257   : > { %p36_p7 = scmp.ge.s32.totalorder %s39_s19, 4  }
0x1259   :  { %38 = sbr.rel (!%p36_p7) target bundleno = 29 (0x1d), region = 232 }
0x1260   :  { %2941 = vsyncpa [#allocation3], 1 }
0x1261   :  { %2943 = vsyncpa [#allocation3 + $0x1], 1 }
0x1262   :  { %2944 = vsyncpa [#allocation6], 1 }
0x1263   :  { %2946 = vsyncpa [#allocation6 + $0x1], 1 }
0x1264   :  { %2947 = vsyncpa [#allocation9], 1 }
0x1265   :  { %2949 = vsyncpa [#allocation9 + $0x1], 1 }
0x1266   :  { %2950 = vsyncpa [#allocation12], 1 }
0x1267   :  { %2952 = vsyncpa [#allocation12 + $0x1], 1 }
0x1268   :  { %2953 = vsyncpa [#allocation4], 1 }
0x1269   :  { %2955 = vsyncpa [#allocation4 + $0x1], 1 }

</bundles_post_ra>
